<compile_context>
chip_gen: v7x
topology: tpu7x:2x2x1
jax: 0.10.0
libtpu: 0.0.40
codegen_flags: <defaults>
</compile_context>

<pallas_src>
import functools

import jax
import jax.numpy as jnp
from jax.experimental import pallas as pl
from jax.experimental.pallas import tpu as pltpu

LN_EPS = 1e-5  # PyTorch nn.LayerNorm default


def _round_up(x, m):
    return ((x + m - 1) // m) * m


def _cores_per_chip():
    """2 TensorCores per chip only on v7x; v5e / v6e have 1."""
    try:
        kind = jax.devices()[0].device_kind.lower()
    except Exception:
        return 1
    return 2 if ("v7" in kind or "7x" in kind) else 1


def residual_path_kernel(x_ref, w1_ref, p_ref, w2_ref, o_ref, *, compute_dtype):
    # Streamed f32 x tile cast to the MXU compute dtype in-kernel (no extra HBM
    # copy in the wrapper); both matmuls accumulate in f32.
    x = x_ref[...].astype(compute_dtype)

    # Packed per-feature params: rows = [b1; gamma; beta; b2], each (1, L).
    b1 = p_ref[0:1, :]
    gamma = p_ref[1:2, :]
    beta = p_ref[2:3, :]
    b2 = p_ref[3:4, :]

    # residual_proj: Linear(E -> L)
    h = jnp.dot(x, w1_ref[...], preferred_element_type=jnp.float32) + b1

    # residual_norm: LayerNorm over last dim (L), two-pass stats in f32
    # (biased variance, eps inside the sqrt — PyTorch semantics).
    mean = jnp.mean(h, axis=-1, keepdims=True)
    hc = h - mean
    var = jnp.mean(hc * hc, axis=-1, keepdims=True)
    hn = hc * jax.lax.rsqrt(var + LN_EPS)
    hn = hn * gamma + beta

    # nonlinearity: ReLU; cast to the weight dtype so the second matmul runs at
    # bf16 MXU rate (accumulation stays f32).
    a = jnp.maximum(hn, 0.0).astype(w2_ref.dtype)

    # dropout: eval-mode identity.
    # TODO(synk): training-mode dropout (random mask) not implemented; eval semantics only.

    # residual_head: Linear(L -> L)
    out = jnp.dot(a, w2_ref[...], preferred_element_type=jnp.float32) + b2
    o_ref[...] = out.astype(o_ref.dtype)


def residual_prediction_path(x, w1, b1, gamma, beta, w2, b2, *,
                             tm=512, compute_dtype=jnp.bfloat16,
                             out_dtype=jnp.float32):
    """x: (N, E) f32. w1: (E, L), w2: (L, L) stored (in, out);
    b1/gamma/beta/b2: (1, L). Returns (N, L) in out_dtype."""
    N, E = x.shape
    L = w1.shape[1]

    # Row tile: multiple of 16 (bf16 sublane packing). Split into >=2 grid
    # steps only on chips with 2 TensorCores (v7x); otherwise one big step
    # amortizes the per-step fixed cost.
    cores = _cores_per_chip()
    steps_target = cores if (cores > 1 and N >= 32) else 1
    tm_eff = max(16, min(tm, _round_up(pl.cdiv(N, steps_target), 16)))
    grid = (pl.cdiv(N, tm_eff),)   # ragged last block handled by Pallas

    # Resident weights cast once (tiny, constant index_map -> single DMA).
    w1c = w1.astype(compute_dtype)
    w2c = w2.astype(compute_dtype)
    # Pack the four (1, L) per-feature params into one operand.
    params = jnp.concatenate(
        [b1.reshape(1, L), gamma.reshape(1, L), beta.reshape(1, L), b2.reshape(1, L)],
        axis=0).astype(jnp.float32)

    w_itemsize = jnp.dtype(compute_dtype).itemsize
    out_itemsize = jnp.dtype(out_dtype).itemsize
    cost = pl.CostEstimate(
        flops=2 * N * (E * L + L * L),
        transcendentals=0,
        bytes_accessed=(N * E * x.dtype.itemsize          # streamed x (f32)
                        + N * L * out_itemsize            # output
                        + (E * L + L * L) * w_itemsize    # resident weights
                        + 4 * L * 4),                     # packed params
    )

    # VMEM budget (double-buffered x / out blocks + double-buffered weights).
    est_vmem = (2 * tm_eff * E * x.dtype.itemsize
                + 2 * tm_eff * L * out_itemsize
                + 2 * (E * L + L * L) * w_itemsize
                + 2 * 8 * L * 4)
    compiler_kwargs = dict(dimension_semantics=("parallel",))
    if est_vmem > 16 * 1024 * 1024:   # only raise when the default scoped limit binds
        compiler_kwargs["vmem_limit_bytes"] = int(min(est_vmem * 3 // 2, 48 * 1024 * 1024))

    kernel = functools.partial(residual_path_kernel, compute_dtype=compute_dtype)

    return pl.pallas_call(
        kernel,
        out_shape=jax.ShapeDtypeStruct((N, L), out_dtype),
        grid_spec=pltpu.PrefetchScalarGridSpec(
            num_scalar_prefetch=0,
            grid=grid,
            in_specs=[
                pl.BlockSpec((tm_eff, E), lambda i: (i, 0)),   # x tile (streamed f32)
                pl.BlockSpec((E, L), lambda i: (0, 0)),        # W1 (resident)
                pl.BlockSpec((4, L), lambda i: (0, 0)),        # [b1; gamma; beta; b2]
                pl.BlockSpec((L, L), lambda i: (0, 0)),        # W2 (resident)
            ],
            out_specs=pl.BlockSpec((tm_eff, L), lambda i: (i, 0)),
        ),
        compiler_params=pltpu.CompilerParams(**compiler_kwargs),
        cost_estimate=cost,
    )(x, w1c, params, w2c)


def reference(x, w1, b1, gamma, beta, w2, b2):
    hp = jax.lax.Precision.HIGHEST
    h = jnp.dot(x, w1, precision=hp) + b1
    mean = jnp.mean(h, axis=-1, keepdims=True)
    var = jnp.mean((h - mean) ** 2, axis=-1, keepdims=True)
    hn = (h - mean) / jnp.sqrt(var + LN_EPS)
    hn = hn * gamma + beta
    a = jnp.maximum(hn, 0.0)
    return jnp.dot(a, w2, precision=hp) + b2


if __name__ == "__main__":
    # Small shapes consistent with the module (embedding_dim -> latent_dim).
    N = 300     # rows (e.g. batch=2 * seq=150); deliberately NOT a multiple of the tile
    E = 384     # embedding_dim (DPADConfig default)
    L = 128     # latent_dim (scaled 64 -> 128 to keep the output lane-dense)

    key = jax.random.PRNGKey(0)
    kx, k1, kb1, k2, kb2 = jax.random.split(key, 5)

    x = jax.random.normal(kx, (N, E), dtype=jnp.float32)

    # Deterministic parameter init (Linear weights stored pre-transposed as (in, out)).
    w1 = jax.random.normal(k1, (E, L), dtype=jnp.float32) * (1.0 / jnp.sqrt(E))
    b1 = jax.random.normal(kb1, (1, L), dtype=jnp.float32) * 0.01
    gamma = jnp.ones((1, L), dtype=jnp.float32)    # LayerNorm weight init
    beta = jnp.zeros((1, L), dtype=jnp.float32)    # LayerNorm bias init
    w2 = jax.random.normal(k2, (L, L), dtype=jnp.float32) * (1.0 / jnp.sqrt(L))
    b2 = jax.random.normal(kb2, (1, L), dtype=jnp.float32) * 0.01

    ref = reference(x, w1, b1, gamma, beta, w2, b2)

    # Full-f32 path: tight-ish correctness check (tolerant of MXU f32 pass modes).
    out_f32 = residual_prediction_path(x, w1, b1, gamma, beta, w2, b2,
                                       compute_dtype=jnp.float32)
    out_f32 = jax.block_until_ready(out_f32)
    assert out_f32.shape == (N, L)
    assert jnp.allclose(out_f32, ref, atol=2e-2, rtol=1e-2), "f32 mismatch vs reference"

    # Default bf16 streaming path: looser tolerance (bf16 MXU inputs, f32 accumulation).
    out_bf16 = residual_prediction_path(x, w1, b1, gamma, beta, w2, b2)
    out_bf16 = jax.block_until_ready(out_bf16)
    assert out_bf16.shape == (N, L)
    assert jnp.allclose(out_bf16, ref, atol=2e-1, rtol=1e-1), "bf16 mismatch vs reference"

    print("KERNEL_OK")
</pallas_src>

<mosaic_0001>
module attributes {stable_mosaic.version = 11 : i64} {
  func.func @residual_path_kernel(%arg0: i32, %arg1: memref<304x384xf32, #tpu.memory_space<vmem>>, %arg2: memref<384x128xf32, #tpu.memory_space<vmem>>, %arg3: memref<4x128xf32, #tpu.memory_space<vmem>>, %arg4: memref<128x128xf32, #tpu.memory_space<vmem>>, %arg5: memref<304x128xf32, #tpu.memory_space<vmem>>) attributes {dimension_semantics = [#tpu.dimension_semantics<parallel>], iteration_bounds = array<i64: 1>, scalar_prefetch = 0 : i64, scratch_operands = 0 : i64, tpu.core_type = #tpu.core_type<tc>, window_params = [{transform_indices = @transform_0, window_bounds = array<i64: 304, 384>}, {pipeline_mode = #tpu.pipeline_mode<synchronous>, transform_indices = @transform_1, window_bounds = array<i64: 384, 128>}, {pipeline_mode = #tpu.pipeline_mode<synchronous>, transform_indices = @transform_2, window_bounds = array<i64: 4, 128>}, {pipeline_mode = #tpu.pipeline_mode<synchronous>, transform_indices = @transform_3, window_bounds = array<i64: 128, 128>}, {transform_indices = @transform_4, window_bounds = array<i64: 304, 128>}]} {
    %c0 = arith.constant 0 : index
    %c0_0 = arith.constant 0 : index
    %0 = vector.load %arg1[%c0, %c0_0] : memref<304x384xf32, #tpu.memory_space<vmem>>, vector<304x384xf32>
    %c0_1 = arith.constant 0 : index
    %c0_2 = arith.constant 0 : index
    %1 = vector.load %arg3[%c0_1, %c0_2] : memref<4x128xf32, #tpu.memory_space<vmem>>, vector<1x128xf32>
    %c1 = arith.constant 1 : index
    %c0_3 = arith.constant 0 : index
    %2 = vector.load %arg3[%c1, %c0_3] : memref<4x128xf32, #tpu.memory_space<vmem>>, vector<1x128xf32>
    %c2 = arith.constant 2 : index
    %c0_4 = arith.constant 0 : index
    %3 = vector.load %arg3[%c2, %c0_4] : memref<4x128xf32, #tpu.memory_space<vmem>>, vector<1x128xf32>
    %c3 = arith.constant 3 : index
    %c0_5 = arith.constant 0 : index
    %4 = vector.load %arg3[%c3, %c0_5] : memref<4x128xf32, #tpu.memory_space<vmem>>, vector<1x128xf32>
    %c0_6 = arith.constant 0 : index
    %c0_7 = arith.constant 0 : index
    %5 = vector.load %arg2[%c0_6, %c0_7] : memref<384x128xf32, #tpu.memory_space<vmem>>, vector<384x128xf32>
    %cst = arith.constant dense<0.000000e+00> : vector<304x128xf32>
    %6 = tpu.matmul %0, %5, %cst {dimension_numbers = #tpu.dot_dimension_numbers<[1], [0], [0], [1], [0, 0, 1, 1], [], []>} : vector<304x384xf32>, vector<384x128xf32>, vector<304x128xf32> -> vector<304x128xf32>
    %7 = vector.broadcast %1 : vector<1x128xf32> to vector<304x128xf32>
    %8 = arith.addf %6, %7 : vector<304x128xf32>
    %cst_8 = arith.constant dense<0.000000e+00> : vector<304xf32>
    %9 = vector.multi_reduction <add>, %8, %cst_8 [1] : vector<304x128xf32> to vector<304xf32>
    %10 = vector.shape_cast %9 : vector<304xf32> to vector<304x1xf32>
    %cst_9 = arith.constant 1.280000e+02 : f32
    %11 = vector.broadcast %cst_9 : f32 to vector<304x1xf32>
    %12 = arith.divf %10, %11 : vector<304x1xf32>
    %13 = vector.broadcast %12 : vector<304x1xf32> to vector<304x128xf32>
    %14 = arith.subf %8, %13 : vector<304x128xf32>
    %15 = arith.mulf %14, %14 : vector<304x128xf32>
    %cst_10 = arith.constant dense<0.000000e+00> : vector<304xf32>
    %16 = vector.multi_reduction <add>, %15, %cst_10 [1] : vector<304x128xf32> to vector<304xf32>
    %17 = vector.shape_cast %16 : vector<304xf32> to vector<304x1xf32>
    %cst_11 = arith.constant 1.280000e+02 : f32
    %18 = vector.broadcast %cst_11 : f32 to vector<304x1xf32>
    %19 = arith.divf %17, %18 : vector<304x1xf32>
    %cst_12 = arith.constant 9.99999974E-6 : f32
    %20 = vector.broadcast %cst_12 : f32 to vector<304x1xf32>
    %21 = arith.addf %19, %20 : vector<304x1xf32>
    %22 = math.rsqrt %21 : vector<304x1xf32>
    %23 = vector.broadcast %22 : vector<304x1xf32> to vector<304x128xf32>
    %24 = arith.mulf %14, %23 : vector<304x128xf32>
    %25 = vector.broadcast %2 : vector<1x128xf32> to vector<304x128xf32>
    %26 = arith.mulf %24, %25 : vector<304x128xf32>
    %27 = vector.broadcast %3 : vector<1x128xf32> to vector<304x128xf32>
    %28 = arith.addf %26, %27 : vector<304x128xf32>
    %cst_13 = arith.constant 0.000000e+00 : f32
    %29 = vector.broadcast %cst_13 : f32 to vector<304x128xf32>
    %30 = arith.maximumf %28, %29 : vector<304x128xf32>
    %c0_14 = arith.constant 0 : index
    %c0_15 = arith.constant 0 : index
    %31 = vector.load %arg4[%c0_14, %c0_15] : memref<128x128xf32, #tpu.memory_space<vmem>>, vector<128x128xf32>
    %cst_16 = arith.constant dense<0.000000e+00> : vector<304x128xf32>
    %32 = tpu.matmul %30, %31, %cst_16 {dimension_numbers = #tpu.dot_dimension_numbers<[1], [0], [0], [1], [0, 0, 1, 1], [], []>} : vector<304x128xf32>, vector<128x128xf32>, vector<304x128xf32> -> vector<304x128xf32>
    %33 = vector.broadcast %4 : vector<1x128xf32> to vector<304x128xf32>
    %34 = arith.addf %32, %33 : vector<304x128xf32>
    %c0_17 = arith.constant 0 : index
    %c0_18 = arith.constant 0 : index
    %35 = vector.load %arg5[%c0_17, %c0_18] : memref<304x128xf32, #tpu.memory_space<vmem>>, vector<304x128xf32>
    tpu.vector_store %arg5[%c0_17, %c0_18], %34 {strides = array<i32>} : memref<304x128xf32, #tpu.memory_space<vmem>>, vector<304x128xf32>,
    return
  }
  func.func @transform_0(%arg0: i32) -> (i32, i32) {
    %c0_i32 = arith.constant 0 : i32
    %c0_i32_0 = arith.constant 0 : i32
    return %arg0, %c0_i32 : i32, i32
  }
  func.func @transform_1(%arg0: i32) -> (i32, i32) {
    %c0_i32 = arith.constant 0 : i32
    %c0_i32_0 = arith.constant 0 : i32
    %c0_i32_1 = arith.constant 0 : i32
    return %c0_i32, %c0_i32_0 : i32, i32
  }
  func.func @transform_2(%arg0: i32) -> (i32, i32) {
    %c0_i32 = arith.constant 0 : i32
    %c0_i32_0 = arith.constant 0 : i32
    %c0_i32_1 = arith.constant 0 : i32
    return %c0_i32, %c0_i32_0 : i32, i32
  }
  func.func @transform_3(%arg0: i32) -> (i32, i32) {
    %c0_i32 = arith.constant 0 : i32
    %c0_i32_0 = arith.constant 0 : i32
    %c0_i32_1 = arith.constant 0 : i32
    return %c0_i32, %c0_i32_0 : i32, i32
  }
  func.func @transform_4(%arg0: i32) -> (i32, i32) {
    %c0_i32 = arith.constant 0 : i32
    %c0_i32_0 = arith.constant 0 : i32
    return %arg0, %c0_i32 : i32, i32
  }
}

</mosaic_0001>

<bundles_post_ra>
// kernel: tpu_custom_call.1
= control target key start
LH: loop header
LB: loop body
LE: loop exit
PB: predicated region body
PF: predicated region fallthrough
CT: control target
= control target key end

     0   :  { %9 = vsyncpa [#allocation3], 0  ;;  %s2903_s0 = inlined_call_operand.hbm [shape: f32[300,384], index: 0, kind: input, shape index: {}]   ;;  %s2904_s1 = inlined_call_operand.hbm [shape: f32[384,128], index: 1, kind: input, shape index: {}]   ;;  %s2905_s2 = inlined_call_operand.vmem [shape: f32[4,128], index: 2, kind: input, shape index: {}]   ;;  %s2906_s3 = inlined_call_operand.hbm [shape: f32[128,128], index: 3, kind: input, shape index: {}]   ;;  %s2907_s4 = inlined_call_operand.hbm [shape: f32[300,128], index: 4, kind: output, shape index: {}]  }
   0x1   :  { %10 = vsyncpa [#allocation6], 0 }
   0x2   :  { %11 = vsyncpa [#allocation4], 0  ;;  %s2192_s15 = smov [#allocation5]   ;;  %s2098_s19 = scalar_lea.hbm %s2904_s1, 6144 }
   0x3   :  { %s29_s16 = sshll.u32 %s2192_s15, 4  ;;  %p2099_p0 = scmp.ne.s32.totalorder %s2904_s1, %s2098_s19  ;;  %s30_s16 = int_to_ptr.vmem [resolvable:$true] %s29_s16 }
   0x4   :  { %p2102_p1 = scmp.lt.u32.totalorder %s2098_s19, %s2904_s1 }
   0x6   :  { %p2104_p2 = pnand %p2102_p1, %p2099_p0 }
   0x8   :  { %2107 = shalt.err (!%p2104_p2)
}
   0x9   :  { %s2108_s24 = scalar_lea.vmem %s30_s16, 6144  ;;  %p2113_p4 = scmp.lt.s32.totalorder %s30_s16, %s30_s16 }
   0xa   :  { %p2109_p3 = scmp.ne.s32.totalorder %s30_s16, %s2108_s24  ;;  %p2114_p5 = scmp.lt.s32.totalorder %s2108_s24, %s2108_s24 }
   0xc   :  { %p2115_p6 = por %p2114_p5, %p2113_p4 }
   0xe   :  { %p2116_p7 = pnand %p2115_p6, %p2109_p3 }
  0x10   :  { %2119 = shalt.err (!%p2116_p7)
}
  0x11   :  { %s2193_s25 = smov 128   ;;  %s2194_s26 = smov 8  }
  0x12   :  { %35 = dma.hbm_to_vmem [thread:$0]  %s2904_s1, 6144, %s30_s16, [#allocation6], %s2193_s25, %s2193_s25, %s2194_s26  }
  0x13   :  { %s2195_s29 = smov [#allocation2]   ;;  %s2120_s7 = scalar_lea.hbm %s2903_s0, 14592 }
  0x14   :  { %s17_s30 = sshll.u32 %s2195_s29, 4  ;;  %p2121_p8 = scmp.ne.s32.totalorder %s2903_s0, %s2120_s7  ;;  %s18_s30 = int_to_ptr.vmem [resolvable:$true] %s17_s30 }
  0x15   :  { %p2124_p9 = scmp.lt.u32.totalorder %s2120_s7, %s2903_s0 }
  0x17   :  { %p2126_p10 = pnand %p2124_p9, %p2121_p8 }
  0x19   :  { %2129 = shalt.err (!%p2126_p10)
}
  0x1a   :  { %s2130_s12 = scalar_lea.vmem %s18_s30, 14592  ;;  %p2135_p12 = scmp.lt.s32.totalorder %s18_s30, %s18_s30 }
  0x1b   :  { %p2131_p11 = scmp.ne.s32.totalorder %s18_s30, %s2130_s12  ;;  %p2136_p13 = scmp.lt.s32.totalorder %s2130_s12, %s2130_s12 }
  0x1d   :  { %p2137_p0 = por %p2136_p13, %p2135_p12 }
  0x1f   :  { %p2138_p1 = pnand %p2137_p0, %p2131_p11 }
  0x21   :  { %2141 = shalt.err (!%p2138_p1)
}
  0x22   :  { %s2196_s1 = smov 384   ;;  %s2197_s13 = smov 24  }
  0x23   :  { %23 = dma.hbm_to_vmem [thread:$0]  %s2903_s0, 14592, %s18_s30, [#allocation3], %s2196_s1, %s2196_s1, %s2197_s13  }
  0x24   :  { %s2198_s16 = smov [#allocation7]   ;;  %s2142_s20 = scalar_lea.hbm %s2906_s3, 2048 }
  0x25   :  { %s43_s17 = sshll.u32 %s2198_s16, 4  ;;  %p2143_p2 = scmp.ne.s32.totalorder %s2906_s3, %s2142_s20  ;;  %s44_s17 = int_to_ptr.vmem [resolvable:$true] %s43_s17 }
  0x26   :  { %p2146_p3 = scmp.lt.u32.totalorder %s2142_s20, %s2906_s3 }
  0x28   :  { %p2148_p4 = pnand %p2146_p3, %p2143_p2 }
  0x2a   :  { %2151 = shalt.err (!%p2148_p4)
}
  0x2b   :  { %s2152_s27 = scalar_lea.vmem %s44_s17, 2048  ;;  %p2157_p6 = scmp.lt.s32.totalorder %s44_s17, %s44_s17 }
  0x2c   :  { %p2153_p5 = scmp.ne.s32.totalorder %s44_s17, %s2152_s27  ;;  %p2158_p7 = scmp.lt.s32.totalorder %s2152_s27, %s2152_s27 }
  0x2e   :  { %p2159_p8 = por %p2158_p7, %p2157_p6 }
  0x30   :  { %p2160_p9 = pnand %p2159_p8, %p2153_p5 }
  0x32   :  { %2163 = shalt.err (!%p2160_p9)
}
  0x33   :  { %49 = dma.hbm_to_vmem [thread:$0]  %s2906_s3, 2048, %s44_s17, [#allocation6], %s2193_s25, %s2193_s25, %s2194_s26  }
  0x34   :  { %2186 = dma.done.wait [#allocation3], 14592  }
  0x35   :  { %2187 = vsyncadd [#allocation3], 4294952704 }
  0x36   :  { %2188 = dma.done.wait [#allocation6], 8192  }
  0x37   :  { %2189 = vsyncadd [#allocation6], 4294959104  ;;  %v2199_v0 = vmov 0.0|0.0   ;;  %v177_v1 = vld [vmem:[#allocation5] sm:$0xff]  ;;  %v178_v2 = vld [vmem:[#allocation5 + $0x8] sm:$0xff] }
  0x38   :  { %1901 = vmatprep.subr.bf16.mxu0 %v2199_v0  ;;  %v179_v3 = vld [vmem:[#allocation5 + $0x10] sm:$0xff]  ;;  %v1902_v4 = vpack.c.bf16 %v178_v2, %v177_v1  ;;  %v180_v5 = vld [vmem:[#allocation5 + $0x18] sm:$0xff]  ;;  %v181_v7 = vld [vmem:[#allocation5 + $0x20] sm:$0xff] }
  0x39   :  { %v1905_v6 = vpack.c.bf16 %v180_v5, %v179_v3  ;;  %v182_v8 = vld [vmem:[#allocation5 + $0x28] sm:$0xff]  ;;  %v209_v9 = vld [vmem:[#allocation5 + $0x100] sm:$0xff]  ;;  %v211_v13 = vld [vmem:[#allocation5 + $0x110] sm:$0xff] }
  0x3a   :  { %1903 = vmatpush1.bf16.msra.mxu0 %v1902_v4  ;;  %v210_v10 = vld [vmem:[#allocation5 + $0x108] sm:$0xff]  ;;  %v1908_v11 = vpack.c.bf16 %v182_v8, %v181_v7  ;;  %v212_v14 = vld [vmem:[#allocation5 + $0x118] sm:$0xff]  ;;  %v183_v15 = vld [vmem:[#allocation5 + $0x30] sm:$0xff] }
  0x3b   :  { %1904 = vmatprep.subr.bf16.mxu0 %v2199_v0  ;;  %v1949_v12 = vpack.c.bf16 %v210_v10, %v209_v9  ;;  %v184_v16 = vld [vmem:[#allocation5 + $0x38] sm:$0xff]  ;;  %v1953_v17 = vpack.c.bf16 %v212_v14, %v211_v13  ;;  %v213_v18 = vld [vmem:[#allocation5 + $0x120] sm:$0xff]  ;;  %v214_v19 = vld [vmem:[#allocation5 + $0x128] sm:$0xff] }
  0x3c   :  { %v1911_v20 = vpack.c.bf16 %v184_v16, %v183_v15  ;;  %v185_v21 = vld [vmem:[#allocation5 + $0x40] sm:$0xff]  ;;  %v1957_v22 = vpack.c.bf16 %v214_v19, %v213_v18  ;;  %v186_v23 = vld [vmem:[#allocation5 + $0x48] sm:$0xff]  ;;  %v215_v24 = vld [vmem:[#allocation5 + $0x130] sm:$0xff] }
  0x3d   :  { %1950 = vmatprep.subr.bf16.mxu1 %v1949_v12  ;;  %v216_v25 = vld [vmem:[#allocation5 + $0x138] sm:$0xff]  ;;  %v1914_v26 = vpack.c.bf16 %v186_v23, %v185_v21  ;;  %v187_v27 = vld [vmem:[#allocation5 + $0x50] sm:$0xff]  ;;  %v217_v30 = vld [vmem:[#allocation5 + $0x140] sm:$0xff] }
  0x3e   :  { %1906 = vmatpush1.bf16.msra.mxu0 %v1905_v6  ;;  %1952 = vmatpush3.bf16.msra.mxu1 %v1949_v12  ;;  %v188_v28 = vld [vmem:[#allocation5 + $0x58] sm:$0xff]  ;;  %v1961_v29 = vpack.c.bf16 %v216_v25, %v215_v24  ;;  %v218_v31 = vld [vmem:[#allocation5 + $0x148] sm:$0xff]  ;;  %v61_v33 = vld [vmem:[#allocation2 + $0x10] sm:$0xff] }
  0x3f   :  { %1907 = vmatprep.subr.bf16.mxu0 %v2199_v0  ;;  %1954 = vmatprep.subr.bf16.mxu1 %v1953_v17  ;;  %v60_v32 = vld [vmem:[#allocation2 + $0x8] sm:$0xff]  ;;  %v1917_v34 = vpack.c.bf16 %v188_v28, %v187_v27  ;;  %v189_v35 = vld [vmem:[#allocation5 + $0x60] sm:$0xff]  ;;  %v1965_v36 = vpack.c.bf16 %v218_v31, %v217_v30  ;;  %v190_v37 = vld [vmem:[#allocation5 + $0x68] sm:$0xff] }
  0x40   :  { %293 = vmatprep.mubr.f32.mxu0 %v60_v32  ;;  %1755 = vmatprep.mubr.f32.mxu1 %v61_v33  ;;  %v219_v38 = vld [vmem:[#allocation5 + $0x150] sm:$0xff]  ;;  %v220_v39 = vld [vmem:[#allocation5 + $0x158] sm:$0xff]  ;;  %v1920_v40 = vpack.c.bf16 %v190_v37, %v189_v35  ;;  %v221_v44 = vld [vmem:[#allocation5 + $0x160] sm:$0xff] }
  0x41   :  { %v191_v41 = vld [vmem:[#allocation5 + $0x70] sm:$0xff]  ;;  %v1969_v42 = vpack.c.bf16 %v220_v39, %v219_v38  ;;  %v192_v43 = vld [vmem:[#allocation5 + $0x78] sm:$0xff]  ;;  %v222_v45 = vld [vmem:[#allocation5 + $0x168] sm:$0xff] }
  0x42   :  { %1909 = vmatpush1.bf16.msra.mxu0 %v1908_v11  ;;  %1956 = vmatpush3.bf16.msra.mxu1 %v1953_v17  ;;  %v1923_v46 = vpack.c.bf16 %v192_v43, %v191_v41  ;;  %v193_v47 = vld [vmem:[#allocation5 + $0x80] sm:$0xff]  ;;  %v1973_v48 = vpack.c.bf16 %v222_v45, %v221_v44  ;;  %v194_v49 = vld [vmem:[#allocation5 + $0x88] sm:$0xff]  ;;  %v223_v50 = vld [vmem:[#allocation5 + $0x170] sm:$0xff] }
  0x43   :  { %1910 = vmatprep.subr.bf16.mxu0 %v2199_v0  ;;  %1958 = vmatprep.subr.bf16.mxu1 %v1957_v22  ;;  %v224_v51 = vld [vmem:[#allocation5 + $0x178] sm:$0xff]  ;;  %v1926_v52 = vpack.c.bf16 %v194_v49, %v193_v47  ;;  %v195_v54 = vld [vmem:[#allocation5 + $0x90] sm:$0xff]  ;;  %v197_v57 = vld [vmem:[#allocation5 + $0xa0] sm:$0xff] }
  0x44   :  { %v1977_v53 = vpack.c.bf16 %v224_v51, %v223_v50  ;;  %v196_v55 = vld [vmem:[#allocation5 + $0x98] sm:$0xff]  ;;  %v198_v58 = vld [vmem:[#allocation5 + $0xa8] sm:$0xff]  ;;  %v67_v61 = vld [vmem:[#allocation2 + $0x40] sm:$0xff] }
  0x45   :  { %v1929_v56 = vpack.c.bf16 %v196_v55, %v195_v54  ;;  %v64_v59 = vld [vmem:[#allocation2 + $0x28] sm:$0xff]  ;;  %v1932_v60 = vpack.c.bf16 %v198_v58, %v197_v57  ;;  %v199_v62 = vld [vmem:[#allocation5 + $0xb0] sm:$0xff]  ;;  %v70_v1 = vld [vmem:[#allocation2 + $0x58] sm:$0xff] }
  0x46   :  { %1912 = vmatpush1.bf16.msra.mxu0 %v1911_v20  ;;  %1960 = vmatpush3.bf16.msra.mxu1 %v1957_v22  ;;  %v200_v63 = vld [vmem:[#allocation5 + $0xb8] sm:$0xff]  ;;  %v73_v3 = vld [vmem:[#allocation2 + $0x70] sm:$0xff]  ;;  %v202_v5 = vld [vmem:[#allocation5 + $0xc8] sm:$0xff] }
  0x47   :  { %1913 = vmatprep.subr.bf16.mxu0 %v2199_v0  ;;  %1962 = vmatprep.subr.bf16.mxu1 %v1961_v29  ;;  %v1935_v2 = vpack.c.bf16 %v200_v63, %v199_v62  ;;  %v201_v4 = vld [vmem:[#allocation5 + $0xc0] sm:$0xff]  ;;  %v76_v6 = vld [vmem:[#allocation2 + $0x88] sm:$0xff]  ;;  %v79_v8 = vld [vmem:[#allocation2 + $0xa0] sm:$0xff] }
  0x48   :  { %v1938_v7 = vpack.c.bf16 %v202_v5, %v201_v4  ;;  %v203_v9 = vld [vmem:[#allocation5 + $0xd0] sm:$0xff]  ;;  %v204_v10 = vld [vmem:[#allocation5 + $0xd8] sm:$0xff]  ;;  %v82_v11 = vld [vmem:[#allocation2 + $0xb8] sm:$0xff] }
  0x49   :  { %v1941_v12 = vpack.c.bf16 %v204_v10, %v203_v9  ;;  %v85_v13 = vld [vmem:[#allocation2 + $0xd0] sm:$0xff]  ;;  %v206_v15 = vld [vmem:[#allocation5 + $0xe8] sm:$0xff]  ;;  %v88_v16 = vld [vmem:[#allocation2 + $0xe8] sm:$0xff] }
  0x4a   :  { %1915 = vmatpush1.bf16.msra.mxu0 %v1914_v26  ;;  %1964 = vmatpush3.bf16.msra.mxu1 %v1961_v29  ;;  %v205_v14 = vld [vmem:[#allocation5 + $0xe0] sm:$0xff]  ;;  %v91_v18 = vld [vmem:[#allocation2 + $0x100] sm:$0xff]  ;;  %v208_v20 = vld [vmem:[#allocation5 + $0xf8] sm:$0xff] }
  0x4b   :  { %1916 = vmatprep.subr.bf16.mxu0 %v2199_v0  ;;  %1966 = vmatprep.subr.bf16.mxu1 %v1965_v36  ;;  %v1944_v17 = vpack.c.bf16 %v206_v15, %v205_v14  ;;  %v207_v19 = vld [vmem:[#allocation5 + $0xf0] sm:$0xff]  ;;  %v94_v21 = vld [vmem:[#allocation2 + $0x118] sm:$0xff]  ;;  %v97_v23 = vld [vmem:[#allocation2 + $0x130] sm:$0xff] }
  0x4c   :  { %v1947_v22 = vpack.c.bf16 %v208_v20, %v207_v19  ;;  %v100_v24 = vld [vmem:[#allocation2 + $0x148] sm:$0xff]  ;;  %v59_v25 = vld [vmem:[#allocation2] sm:$0xff]  ;;  %v106_v28 = vld [vmem:[#allocation2 + $0x178] sm:$0xff] }
  0x4d   :  { %v103_v26 = vld [vmem:[#allocation2 + $0x160] sm:$0xff]  ;;  %v62_v29 = vld [vmem:[#allocation2 + $0x18] sm:$0xff]  ;;  %v109_v30 = vld [vmem:[#allocation2 + $0x190] sm:$0xff] }
  0x4e   :  { %1918 = vmatpush1.bf16.msra.mxu0 %v1917_v34  ;;  %1968 = vmatpush3.bf16.msra.mxu1 %v1965_v36  ;;  %v63_v27 = vld [vmem:[#allocation2 + $0x20] sm:$0xff]  ;;  %v66_v31 = vld [vmem:[#allocation2 + $0x38] sm:$0xff]  ;;  %v112_v32 = vld [vmem:[#allocation2 + $0x1a8] sm:$0xff] }
  0x4f   :  { %1919 = vmatprep.subr.bf16.mxu0 %v2199_v0  ;;  %1970 = vmatprep.subr.bf16.mxu1 %v1969_v42  ;;  %v115_v33 = vld [vmem:[#allocation2 + $0x1c0] sm:$0xff]  ;;  %v69_v34 = vld [vmem:[#allocation2 + $0x50] sm:$0xff]  ;;  %v118_v35 = vld [vmem:[#allocation2 + $0x1d8] sm:$0xff] }
  0x50   :  { %v68_v36 = vld [vmem:[#allocation2 + $0x48] sm:$0xff]  ;;  %v121_v37 = vld [vmem:[#allocation2 + $0x1f0] sm:$0xff]  ;;  %v127_v41 = vld [vmem:[#allocation2 + $0x220] sm:$0xff] }
  0x51   :  { %v72_v38 = vld [vmem:[#allocation2 + $0x68] sm:$0xff]  ;;  %v130_v43 = vld [vmem:[#allocation2 + $0x238] sm:$0xff]  ;;  %v133_v45 = vld [vmem:[#allocation2 + $0x250] sm:$0xff] }
  0x52   :  { %1921 = vmatpush1.bf16.msra.mxu0 %v1920_v40  ;;  %1972 = vmatpush3.bf16.msra.mxu1 %v1969_v42  ;;  %v124_v39 = vld [vmem:[#allocation2 + $0x208] sm:$0xff]  ;;  %v71_v40 = vld [vmem:[#allocation2 + $0x60] sm:$0xff]  ;;  %v74_v44 = vld [vmem:[#allocation2 + $0x78] sm:$0xff] }
  0x53   :  { %1922 = vmatprep.subr.bf16.mxu0 %v2199_v0  ;;  %1974 = vmatprep.subr.bf16.mxu1 %v1973_v48  ;;  %v75_v42 = vld [vmem:[#allocation2 + $0x80] sm:$0xff]  ;;  %v136_v47 = vld [vmem:[#allocation2 + $0x268] sm:$0xff]  ;;  %v81_v50 = vld [vmem:[#allocation2 + $0xb0] sm:$0xff] }
  0x54   :  { %v139_v49 = vld [vmem:[#allocation2 + $0x280] sm:$0xff]  ;;  %v142_v51 = vld [vmem:[#allocation2 + $0x298] sm:$0xff]  ;;  %v84_v54 = vld [vmem:[#allocation2 + $0xc8] sm:$0xff] }
  0x55   :  { %v148_v55 = vld [vmem:[#allocation2 + $0x2c8] sm:$0xff]  ;;  %v151_v57 = vld [vmem:[#allocation2 + $0x2e0] sm:$0xff]  ;;  %v90_v62 = vld [vmem:[#allocation2 + $0xf8] sm:$0xff] }
  0x56   :  { %1924 = vmatpush1.bf16.msra.mxu0 %v1923_v46  ;;  %1976 = vmatpush3.bf16.msra.mxu1 %v1973_v48  ;;  %v78_v46 = vld [vmem:[#allocation2 + $0x98] sm:$0xff]  ;;  %v77_v48 = vld [vmem:[#allocation2 + $0x90] sm:$0xff]  ;;  %v87_v58 = vld [vmem:[#allocation2 + $0xe0] sm:$0xff] }
  0x57   :  { %1925 = vmatprep.subr.bf16.mxu0 %v2199_v0  ;;  %1978 = vmatprep.subr.bf16.mxu1 %v1977_v53  ;;  %v160_v63 = vld [vmem:[#allocation2 + $0x328] sm:$0xff]  ;;  %v166_v4 = vld [vmem:[#allocation2 + $0x358] sm:$0xff]  ;;  %v95_v9 = vld [vmem:[#allocation2 + $0x120] sm:$0xff] }
  0x58   :  { %v92_v5 = vld [vmem:[#allocation2 + $0x108] sm:$0xff]  ;;  %v99_v10 = vld [vmem:[#allocation2 + $0x140] sm:$0xff]  ;;  %v105_v14 = vld [vmem:[#allocation2 + $0x170] sm:$0xff] }
  0x59   :  { %v104_v15 = vld [vmem:[#allocation2 + $0x168] sm:$0xff]  ;;  %v110_v19 = vld [vmem:[#allocation2 + $0x198] sm:$0xff] }
  0x5a   :  { %1927 = vmatpush1.bf16.msra.mxu0 %v1926_v52  ;;  %1980 = vmatpush3.bf16.msra.mxu1 %v1977_v53  ;;  %v80_v52 = vld [vmem:[#allocation2 + $0xa8] sm:$0xff]  ;;  %v145_v53 = vld [vmem:[#allocation2 + $0x2b0] sm:$0xff]  ;;  %v114_v20 = vld [vmem:[#allocation2 + $0x1b8] sm:$0xff] }
  0x5b   :  { %1928 = vmatprep.subr.bf16.mxu0 %v2199_v0 }
  0x5d   :  { %1756 = vmatmul.mubr.f32.vlgmr.msra.gmra.mrb[0].mxu1 %v64_v59  ;;  %v154_v59 = vld [vmem:[#allocation2 + $0x2f8] sm:$0xff] }
  0x5e   :  { %1930 = vmatpush1.bf16.msra.mxu0 %v1929_v56  ;;  %1758 = vmatprep.mubr.f32.mxu1 %v67_v61  ;;  %v83_v56 = vld [vmem:[#allocation2 + $0xc0] sm:$0xff]  ;;  %v157_v61 = vld [vmem:[#allocation2 + $0x310] sm:$0xff] }
  0x5f   :  { %1931 = vmatprep.subr.bf16.mxu0 %v2199_v0 }
  0x61   :  { %1759 = vmatmul.mubr.f32.gmra.mrb[2].mxu1 %v70_v1  ;;  %v89_v1 = vld [vmem:[#allocation2 + $0xf0] sm:$0xff] }
  0x62   :  { %1933 = vmatpush1.bf16.msra.mxu0 %v1932_v60  ;;  %1761 = vmatprep.mubr.f32.mxu1 %v73_v3  ;;  %v86_v60 = vld [vmem:[#allocation2 + $0xd8] sm:$0xff]  ;;  %v93_v3 = vld [vmem:[#allocation2 + $0x110] sm:$0xff] }
  0x63   :  { %1934 = vmatprep.subr.bf16.mxu0 %v2199_v0 }
  0x65   :  { %1762 = vmatmul.mubr.f32.gmra.mrb[4].mxu1 %v76_v6  ;;  %v169_v6 = vld [vmem:[#allocation2 + $0x370] sm:$0xff] }
  0x66   :  { %1936 = vmatpush1.bf16.msra.mxu0 %v1935_v2  ;;  %1764 = vmatprep.mubr.f32.mxu1 %v79_v8  ;;  %v163_v2 = vld [vmem:[#allocation2 + $0x340] sm:$0xff]  ;;  %v172_v8 = vld [vmem:[#allocation2 + $0x388] sm:$0xff] }
  0x67   :  { %1937 = vmatprep.subr.bf16.mxu0 %v2199_v0 }
  0x69   :  { %1765 = vmatmul.mubr.f32.gmra.mrb[6].mxu1 %v82_v11  ;;  %v98_v11 = vld [vmem:[#allocation2 + $0x138] sm:$0xff] }
  0x6a   :  { %1939 = vmatpush1.bf16.msra.mxu0 %v1938_v7  ;;  %1767 = vmatprep.mubr.f32.mxu1 %v85_v13  ;;  %v96_v7 = vld [vmem:[#allocation2 + $0x128] sm:$0xff]  ;;  %v101_v13 = vld [vmem:[#allocation2 + $0x150] sm:$0xff] }
  0x6b   :  { %1940 = vmatprep.subr.bf16.mxu0 %v2199_v0 }
  0x6d   :  { %1768 = vmatmul.mubr.f32.gmra.mrb[8].mxu1 %v88_v16  ;;  %v108_v16 = vld [vmem:[#allocation2 + $0x188] sm:$0xff] }
  0x6e   :  { %1942 = vmatpush1.bf16.msra.mxu0 %v1941_v12  ;;  %1770 = vmatprep.mubr.f32.mxu1 %v91_v18  ;;  %v102_v12 = vld [vmem:[#allocation2 + $0x158] sm:$0xff]  ;;  %v111_v18 = vld [vmem:[#allocation2 + $0x1a0] sm:$0xff] }
  0x6f   :  { %1943 = vmatprep.subr.bf16.mxu0 %v2199_v0 }
  0x71   :  { %1771 = vmatmul.mubr.f32.gmra.mrb[10].mxu1 %v94_v21  ;;  %v113_v21 = vld [vmem:[#allocation2 + $0x1b0] sm:$0xff] }
  0x72   :  { %1945 = vmatpush1.bf16.msra.mxu0 %v1944_v17  ;;  %1773 = vmatprep.mubr.f32.mxu1 %v97_v23  ;;  %v107_v17 = vld [vmem:[#allocation2 + $0x180] sm:$0xff]  ;;  %v116_v23 = vld [vmem:[#allocation2 + $0x1c8] sm:$0xff] }
  0x73   :  { %1946 = vmatprep.subr.bf16.mxu0 %v2199_v0  ;;  %v65_v0 = vld [vmem:[#allocation2 + $0x30] sm:$0xff] }
  0x75   :  { %1774 = vmatmul.mubr.f32.gmra.mrb[12].mxu1 %v100_v24  ;;  %v120_v24 = vld [vmem:[#allocation2 + $0x1e8] sm:$0xff] }
  0x76   :  { %1948 = vmatpush1.bf16.msra.mxu0 %v1947_v22  ;;  %1776 = vmatprep.mubr.f32.mxu1 %v103_v26  ;;  %v117_v22 = vld [vmem:[#allocation2 + $0x1d0] sm:$0xff]  ;;  %v123_v26 = vld [vmem:[#allocation2 + $0x200] sm:$0xff] }
  0x79   :  { %294 = vmatmul.mubr.f32.vlgmr.msra.gmra.mrb[0].mxu0 %v59_v25  ;;  %1777 = vmatmul.mubr.f32.gmra.mrb[14].mxu1 %v106_v28  ;;  %v119_v25 = vld [vmem:[#allocation2 + $0x1e0] sm:$0xff]  ;;  %v126_v28 = vld [vmem:[#allocation2 + $0x218] sm:$0xff] }
  0x7a   :  { %298 = vmatprep.mubr.f32.mxu0 %v63_v27  ;;  %1779 = vmatprep.mubr.f32.mxu1 %v109_v30  ;;  %v122_v27 = vld [vmem:[#allocation2 + $0x1f8] sm:$0xff]  ;;  %v129_v30 = vld [vmem:[#allocation2 + $0x230] sm:$0xff] }
  0x7d   :  { %299 = vmatmul.mubr.f32.gmra.mrb[2].mxu0 %v62_v29  ;;  %1780 = vmatmul.mubr.f32.gmra.mrb[16].mxu1 %v112_v32  ;;  %v125_v29 = vld [vmem:[#allocation2 + $0x210] sm:$0xff]  ;;  %v132_v32 = vld [vmem:[#allocation2 + $0x248] sm:$0xff] }
  0x7e   :  { %303 = vmatprep.mubr.f32.mxu0 %v66_v31  ;;  %1782 = vmatprep.mubr.f32.mxu1 %v115_v33  ;;  %v128_v31 = vld [vmem:[#allocation2 + $0x228] sm:$0xff]  ;;  %v135_v33 = vld [vmem:[#allocation2 + $0x260] sm:$0xff] }
  0x81   :  { %304 = vmatmul.mubr.f32.gmra.mrb[4].mxu0 %v65_v0  ;;  %1783 = vmatmul.mubr.f32.gmra.mrb[18].mxu1 %v118_v35  ;;  %v131_v0 = vld [vmem:[#allocation2 + $0x240] sm:$0xff]  ;;  %v138_v35 = vld [vmem:[#allocation2 + $0x278] sm:$0xff] }
  0x82   :  { %308 = vmatprep.mubr.f32.mxu0 %v69_v34  ;;  %1785 = vmatprep.mubr.f32.mxu1 %v121_v37  ;;  %v134_v34 = vld [vmem:[#allocation2 + $0x258] sm:$0xff]  ;;  %v141_v37 = vld [vmem:[#allocation2 + $0x290] sm:$0xff] }
  0x85   :  { %309 = vmatmul.mubr.f32.gmra.mrb[6].mxu0 %v68_v36  ;;  %1786 = vmatmul.mubr.f32.gmra.mrb[20].mxu1 %v124_v39  ;;  %v137_v36 = vld [vmem:[#allocation2 + $0x270] sm:$0xff]  ;;  %v144_v39 = vld [vmem:[#allocation2 + $0x2a8] sm:$0xff] }
  0x86   :  { %313 = vmatprep.mubr.f32.mxu0 %v72_v38  ;;  %1788 = vmatprep.mubr.f32.mxu1 %v127_v41  ;;  %v140_v38 = vld [vmem:[#allocation2 + $0x288] sm:$0xff]  ;;  %v147_v41 = vld [vmem:[#allocation2 + $0x2c0] sm:$0xff] }
  0x89   :  { %314 = vmatmul.mubr.f32.gmra.mrb[8].mxu0 %v71_v40  ;;  %1789 = vmatmul.mubr.f32.gmra.mrb[22].mxu1 %v130_v43  ;;  %v143_v40 = vld [vmem:[#allocation2 + $0x2a0] sm:$0xff]  ;;  %v150_v43 = vld [vmem:[#allocation2 + $0x2d8] sm:$0xff] }
  0x8a   :  { %318 = vmatprep.mubr.f32.mxu0 %v75_v42  ;;  %1791 = vmatprep.mubr.f32.mxu1 %v133_v45  ;;  %v146_v42 = vld [vmem:[#allocation2 + $0x2b8] sm:$0xff]  ;;  %v153_v45 = vld [vmem:[#allocation2 + $0x2f0] sm:$0xff] }
  0x8d   :  { %319 = vmatmul.mubr.f32.gmra.mrb[10].mxu0 %v74_v44  ;;  %1792 = vmatmul.mubr.f32.gmra.mrb[24].mxu1 %v136_v47  ;;  %v149_v44 = vld [vmem:[#allocation2 + $0x2d0] sm:$0xff]  ;;  %v156_v47 = vld [vmem:[#allocation2 + $0x308] sm:$0xff] }
  0x8e   :  { %323 = vmatprep.mubr.f32.mxu0 %v78_v46  ;;  %1794 = vmatprep.mubr.f32.mxu1 %v139_v49  ;;  %v152_v46 = vld [vmem:[#allocation2 + $0x2e8] sm:$0xff]  ;;  %v159_v49 = vld [vmem:[#allocation2 + $0x320] sm:$0xff] }
  0x91   :  { %324 = vmatmul.mubr.f32.gmra.mrb[12].mxu0 %v77_v48  ;;  %1795 = vmatmul.mubr.f32.gmra.mrb[26].mxu1 %v142_v51  ;;  %v155_v48 = vld [vmem:[#allocation2 + $0x300] sm:$0xff]  ;;  %v162_v51 = vld [vmem:[#allocation2 + $0x338] sm:$0xff] }
  0x92   :  { %328 = vmatprep.mubr.f32.mxu0 %v81_v50  ;;  %1797 = vmatprep.mubr.f32.mxu1 %v145_v53  ;;  %v158_v50 = vld [vmem:[#allocation2 + $0x318] sm:$0xff]  ;;  %v165_v53 = vld [vmem:[#allocation2 + $0x350] sm:$0xff] }
  0x95   :  { %329 = vmatmul.mubr.f32.gmra.mrb[14].mxu0 %v80_v52  ;;  %1798 = vmatmul.mubr.f32.gmra.mrb[28].mxu1 %v148_v55  ;;  %v161_v52 = vld [vmem:[#allocation2 + $0x330] sm:$0xff]  ;;  %v168_v55 = vld [vmem:[#allocation2 + $0x368] sm:$0xff] }
  0x96   :  { %333 = vmatprep.mubr.f32.mxu0 %v84_v54  ;;  %1800 = vmatprep.mubr.f32.mxu1 %v151_v57  ;;  %v164_v54 = vld [vmem:[#allocation2 + $0x348] sm:$0xff]  ;;  %v171_v57 = vld [vmem:[#allocation2 + $0x380] sm:$0xff] }
  0x99   :  { %334 = vmatmul.mubr.f32.gmra.mrb[16].mxu0 %v83_v56  ;;  %1801 = vmatmul.mubr.f32.gmra.mrb[30].mxu1 %v154_v59  ;;  %v167_v56 = vld [vmem:[#allocation2 + $0x360] sm:$0xff] }
  0x9a   :  { %338 = vmatprep.mubr.f32.mxu0 %v87_v58  ;;  %1803 = vmatprep.mubr.f32.mxu1 %v157_v61  ;;  %v170_v58 = vld [vmem:[#allocation2 + $0x378] sm:$0xff] }
  0x9d   :  { %339 = vmatmul.mubr.f32.gmra.mrb[18].mxu0 %v86_v60  ;;  %1804 = vmatmul.mubr.f32.gmra.mrb[32].mxu1 %v160_v63 }
  0x9e   :  { %343 = vmatprep.mubr.f32.mxu0 %v90_v62  ;;  %1806 = vmatprep.mubr.f32.mxu1 %v163_v2 }
  0xa1   :  { %344 = vmatmul.mubr.f32.gmra.mrb[20].mxu0 %v89_v1  ;;  %1807 = vmatmul.mubr.f32.gmra.mrb[34].mxu1 %v166_v4 }
  0xa2   :  { %348 = vmatprep.mubr.f32.mxu0 %v93_v3  ;;  %1809 = vmatprep.mubr.f32.mxu1 %v169_v6 }
  0xa5   :  { %349 = vmatmul.mubr.f32.gmra.mrb[22].mxu0 %v92_v5  ;;  %1810 = vmatmul.mubr.f32.gmra.mrb[36].mxu1 %v172_v8  ;;  %v2295_v8 = vld [vmem:[%s2905_s2] ss:$0 sm:$0xff] }
  0xa6   :  { %353 = vmatprep.mubr.f32.mxu0 %v96_v7 }
  0xa9   :  { %354 = vmatmul.mubr.f32.gmra.mrb[24].mxu0 %v95_v9 }
  0xaa   :  { %358 = vmatprep.mubr.f32.mxu0 %v99_v10 }
  0xad   :  { %359 = vmatmul.mubr.f32.gmra.mrb[26].mxu0 %v98_v11 }
  0xae   :  { %363 = vmatprep.mubr.f32.mxu0 %v102_v12 }
  0xb1   :  { %364 = vmatmul.mubr.f32.gmra.mrb[28].mxu0 %v101_v13 }
  0xb2   :  { %368 = vmatprep.mubr.f32.mxu0 %v105_v14 }
  0xb5   :  { %369 = vmatmul.mubr.f32.gmra.mrb[30].mxu0 %v104_v15 }
  0xb6   :  { %373 = vmatprep.mubr.f32.mxu0 %v108_v16 }
  0xb9   :  { %374 = vmatmul.mubr.f32.gmra.mrb[32].mxu0 %v107_v17 }
  0xba   :  { %378 = vmatprep.mubr.f32.mxu0 %v111_v18 }
  0xbd   :  { %379 = vmatmul.mubr.f32.gmra.mrb[34].mxu0 %v110_v19 }
  0xbe   :  { %383 = vmatprep.mubr.f32.mxu0 %v114_v20 }
  0xc1   :  { %384 = vmatmul.mubr.f32.gmra.mrb[36].mxu0 %v113_v21 }
  0xc2   :  { %388 = vmatprep.mubr.f32.mxu0 %v117_v22 }
  0xc5   :  { %389 = vmatmul.mubr.f32.gmra.mrb[38].mxu0 %v116_v23 }
  0xc6   :  { %393 = vmatprep.mubr.f32.mxu0 %v120_v24 }
  0xc9   :  { %394 = vmatmul.mubr.f32.gmra.mrb[40].mxu0 %v119_v25 }
  0xca   :  { %398 = vmatprep.mubr.f32.mxu0 %v123_v26 }
  0xcd   :  { %399 = vmatmul.mubr.f32.gmra.mrb[42].mxu0 %v122_v27 }
  0xce   :  { %403 = vmatprep.mubr.f32.mxu0 %v126_v28 }
  0xd1   :  { %404 = vmatmul.mubr.f32.gmra.mrb[44].mxu0 %v125_v29 }
  0xd2   :  { %408 = vmatprep.mubr.f32.mxu0 %v129_v30 }
  0xd5   :  { %409 = vmatmul.mubr.f32.gmra.mrb[46].mxu0 %v128_v31 }
  0xd6   :  { %413 = vmatprep.mubr.f32.mxu0 %v132_v32 }
  0xd9   :  { %414 = vmatmul.mubr.f32.gmra.mrb[48].mxu0 %v131_v0 }
  0xda   :  { %418 = vmatprep.mubr.f32.mxu0 %v135_v33 }
  0xdd   :  { %419 = vmatmul.mubr.f32.gmra.mrb[50].mxu0 %v134_v34 }
  0xde   :  { %423 = vmatprep.mubr.f32.mxu0 %v138_v35 }
  0xe1   :  { %424 = vmatmul.mubr.f32.gmra.mrb[52].mxu0 %v137_v36 }
  0xe2   :  { %428 = vmatprep.mubr.f32.mxu0 %v141_v37 }
  0xe5   :  { %429 = vmatmul.mubr.f32.gmra.mrb[54].mxu0 %v140_v38 }
  0xe6   :  { %433 = vmatprep.mubr.f32.mxu0 %v144_v39 }
  0xe9   :  { %434 = vmatmul.mubr.f32.gmra.mrb[56].mxu0 %v143_v40 }
  0xea   :  { %438 = vmatprep.mubr.f32.mxu0 %v147_v41 }
  0xed   :  { %439 = vmatmul.mubr.f32.gmra.mrb[58].mxu0 %v146_v42 }
  0xee   :  { %443 = vmatprep.mubr.f32.mxu0 %v150_v43 }
  0xf1   :  { %444 = vmatmul.mubr.f32.gmra.mrb[60].mxu0 %v149_v44 }
  0xf2   :  { %448 = vmatprep.mubr.f32.mxu0 %v153_v45 }
  0xf5   :  { %449 = vmatmul.mubr.f32.gmra.mrb[62].mxu0 %v152_v46 }
  0xf6   :  { %453 = vmatprep.mubr.f32.mxu0 %v156_v47 }
  0xf9   :  { %454 = vmatmul.mubr.f32.gmra.mrb[64].mxu0 %v155_v48 }
  0xfa   :  { %458 = vmatprep.mubr.f32.mxu0 %v159_v49 }
  0xfd   :  { %459 = vmatmul.mubr.f32.gmra.mrb[66].mxu0 %v158_v50 }
  0xfe   :  { %463 = vmatprep.mubr.f32.mxu0 %v162_v51 }
 0x101   :  { %464 = vmatmul.mubr.f32.gmra.mrb[68].mxu0 %v161_v52 }
 0x102   :  { %468 = vmatprep.mubr.f32.mxu0 %v165_v53 }
 0x105   :  { %469 = vmatmul.mubr.f32.gmra.mrb[70].mxu0 %v164_v54 }
 0x106   :  { %473 = vmatprep.mubr.f32.mxu0 %v168_v55 }
 0x109   :  { %474 = vmatmul.mubr.f32.gmra.mrb[72].mxu0 %v167_v56 }
 0x10a   :  { %478 = vmatprep.mubr.f32.mxu0 %v171_v57 }
 0x10d   :  { %479 = vmatmul.mubr.f32.gmra.mrb[74].mxu0 %v170_v58 }
 0x130   :  { %v1757_v59 = vpop.f32.mrb[0].mxu1 }
 0x131   :  { %v550_v60 = vpop.f32.mrb[1].mxu1 }
 0x134   :  { %v1760_v61 = vpop.f32.mrb[2].mxu1 }
 0x135   :  { %v560_v62 = vpop.f32.mrb[3].mxu1 }
 0x138   :  { %v1763_v63 = vpop.f32.mrb[4].mxu1 }
 0x139   :  { %v570_v1 = vpop.f32.mrb[5].mxu1 }
 0x13c   :  { %v1766_v2 = vpop.f32.mrb[6].mxu1 }
 0x13d   :  { %v580_v3 = vpop.f32.mrb[7].mxu1 }
 0x140   :  { %v2284_v4 = vpop.f32.mrb[8].mxu1 }
 0x141   :  { %v2286_v5 = vpop.f32.mrb[9].mxu1 }
 0x144   :  { %v2288_v6 = vpop.f32.mrb[10].mxu1 }
 0x145   :  { %v2290_v7 = vpop.f32.mrb[11].mxu1 }
 0x148   :  { %v2297_v9 = vpop.f32.mrb[12].mxu1 }
 0x149   :  { %v2299_v11 = vpop.f32.mrb[13].mxu1 }
 0x14c   :  { %v295_v10 = vpop.f32.mrb[0].mxu0  ;;  %v2304_v15 = vpop.f32.mrb[14].mxu1 }
 0x14d   :  { %v296_v12 = vadd.f32 %v2295_v8, %v295_v10  ;;  %v297_v13 = vpop.f32.mrb[1].mxu0  ;;  %v2306_v17 = vpop.f32.mrb[15].mxu1 }
 0x14f   :  { %v2302_v14 = vadd.f32 %v550_v60, %v296_v12 }
 0x150   :  { %v300_v16 = vpop.f32.mrb[2].mxu0  ;;  %v2312_v21 = vpop.f32.mrb[16].mxu1 }
 0x151   :  { %v301_v18 = vadd.f32 %v2295_v8, %v300_v16  ;;  %v302_v19 = vpop.f32.mrb[3].mxu0  ;;  %739 = vadd.xlane.f32.xlu0 %v2302_v14  ;;  %v2314_v23 = vpop.f32.mrb[17].mxu1 }
 0x153   :  { %v2310_v20 = vadd.f32 %v1757_v59, %v301_v18 }
 0x154   :  { %v305_v22 = vpop.f32.mrb[4].mxu0  ;;  %v2320_v27 = vpop.f32.mrb[18].mxu1 }
 0x155   :  { %v306_v24 = vadd.f32 %v2295_v8, %v305_v22  ;;  %v307_v25 = vpop.f32.mrb[5].mxu0  ;;  %741 = vadd.xlane.f32.xlu0 %v2310_v20  ;;  %v2322_v29 = vpop.f32.mrb[19].mxu1 }
 0x157   :  { %v2318_v26 = vadd.f32 %v560_v62, %v306_v24 }
 0x158   :  { %v310_v28 = vpop.f32.mrb[6].mxu0  ;;  %v2328_v0 = vpop.f32.mrb[20].mxu1 }
 0x159   :  { %v311_v30 = vadd.f32 %v2295_v8, %v310_v28  ;;  %v312_v31 = vpop.f32.mrb[7].mxu0  ;;  %743 = vadd.xlane.f32.xlu1 %v2318_v26  ;;  %v2330_v34 = vpop.f32.mrb[21].mxu1 }
 0x15b   :  { %v2326_v32 = vadd.f32 %v1760_v61, %v311_v30 }
 0x15c   :  { %v315_v33 = vpop.f32.mrb[8].mxu0  ;;  %v2336_v38 = vpop.f32.mrb[22].mxu1 }
 0x15d   :  { %v316_v35 = vadd.f32 %v2295_v8, %v315_v33  ;;  %v317_v36 = vpop.f32.mrb[9].mxu0  ;;  %745 = vadd.xlane.f32.xlu1 %v2326_v32  ;;  %v2338_v40 = vpop.f32.mrb[23].mxu1 }
 0x15f   :  { %v2334_v37 = vadd.f32 %v570_v1, %v316_v35 }
 0x160   :  { %v320_v39 = vpop.f32.mrb[10].mxu0  ;;  %v2344_v44 = vpop.f32.mrb[24].mxu1 }
 0x161   :  { %v321_v41 = vadd.f32 %v2295_v8, %v320_v39  ;;  %v322_v42 = vpop.f32.mrb[11].mxu0  ;;  %747 = vadd.xlane.f32.xlu0 %v2334_v37  ;;  %v2346_v46 = vpop.f32.mrb[25].mxu1 }
 0x163   :  { %v2342_v43 = vadd.f32 %v1763_v63, %v321_v41 }
 0x164   :  { %v325_v45 = vpop.f32.mrb[12].mxu0  ;;  %v2352_v50 = vpop.f32.mrb[26].mxu1 }
 0x165   :  { %v326_v47 = vadd.f32 %v2295_v8, %v325_v45  ;;  %v327_v48 = vpop.f32.mrb[13].mxu0  ;;  %749 = vadd.xlane.f32.xlu1 %v2342_v43  ;;  %v2354_v52 = vpop.f32.mrb[27].mxu1 }
 0x167   :  { %v2350_v49 = vadd.f32 %v580_v3, %v326_v47 }
 0x168   :  { %v330_v51 = vpop.f32.mrb[14].mxu0  ;;  %v2360_v56 = vpop.f32.mrb[28].mxu1 }
 0x169   :  { %v331_v53 = vadd.f32 %v2295_v8, %v330_v51  ;;  %v332_v54 = vpop.f32.mrb[15].mxu0  ;;  %751 = vadd.xlane.f32.xlu0 %v2350_v49  ;;  %v2362_v58 = vpop.f32.mrb[29].mxu1 }
 0x16b   :  { %v2358_v55 = vadd.f32 %v1766_v2, %v331_v53 }
 0x16c   :  { %v335_v57 = vpop.f32.mrb[16].mxu0  ;;  %v2369_v62 = vpop.f32.mrb[30].mxu1 }
 0x16d   :  { %v336_v59 = vadd.f32 %v2295_v8, %v335_v57  ;;  %v337_v60 = vpop.f32.mrb[17].mxu0  ;;  %753 = vadd.xlane.f32.xlu1 %v2358_v55  ;;  %v2371_v1 = vpop.f32.mrb[31].mxu1 }
 0x16f   :  { %v2367_v61 = vadd.f32 %v2286_v5, %v336_v59 }
 0x170   :  { %v340_v63 = vpop.f32.mrb[18].mxu0  ;;  %v2378_v12 = vpop.f32.mrb[32].mxu1 }
 0x171   :  { %v341_v2 = vadd.f32 %v2295_v8, %v340_v63  ;;  %v342_v3 = vpop.f32.mrb[19].mxu0  ;;  %755 = vadd.xlane.f32.xlu0 %v2367_v61  ;;  %v2380_v16 = vpop.f32.mrb[33].mxu1 }
 0x173   :  { %v2376_v10 = vadd.f32 %v2284_v4, %v341_v2 }
 0x174   :  { %v345_v13 = vpop.f32.mrb[20].mxu0  ;;  %v2387_v22 = vpop.f32.mrb[34].mxu1 }
 0x175   :  { %v346_v5 = vadd.f32 %v2295_v8, %v345_v13  ;;  %v347_v18 = vpop.f32.mrb[21].mxu0  ;;  %757 = vadd.xlane.f32.xlu1 %v2376_v10  ;;  %v2389_v25 = vpop.f32.mrb[35].mxu1 }
 0x177   :  { %v2385_v19 = vadd.f32 %v2290_v7, %v346_v5 }
 0x178   :  { %v350_v24 = vpop.f32.mrb[22].mxu0  ;;  %v2396_v31 = vpop.f32.mrb[36].mxu1 }
 0x179   :  { %v351_v4 = vadd.f32 %v2295_v8, %v350_v24  ;;  %v352_v28 = vpop.f32.mrb[23].mxu0  ;;  %759 = vadd.xlane.f32.xlu0 %v2385_v19  ;;  %v2398_v35 = vpop.f32.mrb[37].mxu1 }
 0x17b   :  { %v2394_v30 = vadd.f32 %v2288_v6, %v351_v4 }
 0x17c   :  { %v355_v33 = vpop.f32.mrb[24].mxu0 }
 0x17d   :  { %v356_v7 = vadd.f32 %v2295_v8, %v355_v33  ;;  %v357_v36 = vpop.f32.mrb[25].mxu0  ;;  %761 = vadd.xlane.f32.xlu1 %v2394_v30 }
 0x17f   :  { %v2403_v39 = vadd.f32 %v2299_v11, %v356_v7 }
 0x180   :  { %v360_v41 = vpop.f32.mrb[26].mxu0 }
 0x181   :  { %v361_v42 = vadd.f32 %v2295_v8, %v360_v41  ;;  %v362_v45 = vpop.f32.mrb[27].mxu0  ;;  %763 = vadd.xlane.f32.xlu0 %v2403_v39 }
 0x183   :  { %v2408_v6 = vadd.f32 %v2297_v9, %v361_v42 }
 0x184   :  { %v365_v47 = vpop.f32.mrb[28].mxu0 }
 0x185   :  { %v366_v48 = vadd.f32 %v2295_v8, %v365_v47  ;;  %v367_v51 = vpop.f32.mrb[29].mxu0  ;;  %765 = vadd.xlane.f32.xlu1 %v2408_v6 }
 0x187   :  { %v2413_v53 = vadd.f32 %v2306_v17, %v366_v48 }
 0x188   :  { %v370_v11 = vpop.f32.mrb[30].mxu0 }
 0x189   :  { %v371_v54 = vadd.f32 %v2295_v8, %v370_v11  ;;  %v372_v57 = vpop.f32.mrb[31].mxu0  ;;  %767 = vadd.xlane.f32.xlu0 %v2413_v53 }
 0x18b   :  { %v2418_v59 = vadd.f32 %v2304_v15, %v371_v54 }
 0x18c   :  { %v375_v9 = vpop.f32.mrb[32].mxu0 }
 0x18d   :  { %v376_v60 = vadd.f32 %v2295_v8, %v375_v9  ;;  %v377_v63 = vpop.f32.mrb[33].mxu0  ;;  %769 = vadd.xlane.f32.xlu1 %v2418_v59 }
 0x18f   :  { %v2423_v2 = vadd.f32 %v2314_v23, %v376_v60 }
 0x190   :  { %v380_v17 = vpop.f32.mrb[34].mxu0 }
 0x191   :  { %v381_v3 = vadd.f32 %v2295_v8, %v380_v17  ;;  %v382_v13 = vpop.f32.mrb[35].mxu0  ;;  %771 = vadd.xlane.f32.xlu0 %v2423_v2 }
 0x193   :  { %v2428_v5 = vadd.f32 %v2312_v21, %v381_v3 }
 0x194   :  { %v385_v15 = vpop.f32.mrb[36].mxu0 }
 0x195   :  { %v386_v18 = vadd.f32 %v2295_v8, %v385_v15  ;;  %v387_v24 = vpop.f32.mrb[37].mxu0  ;;  %773 = vadd.xlane.f32.xlu1 %v2428_v5 }
 0x197   :  { %v2433_v4 = vadd.f32 %v2322_v29, %v386_v18 }
 0x198   :  { %v390_v23 = vpop.f32.mrb[38].mxu0 }
 0x199   :  { %v391_v28 = vadd.f32 %v2295_v8, %v390_v23  ;;  %v392_v33 = vpop.f32.mrb[39].mxu0  ;;  %775 = vadd.xlane.f32.xlu0 %v2433_v4 }
 0x19b   :  { %v2438_v7 = vadd.f32 %v2320_v27, %v391_v28 }
 0x19c   :  { %v395_v21 = vpop.f32.mrb[40].mxu0 }
 0x19d   :  { %v396_v36 = vadd.f32 %v2295_v8, %v395_v21  ;;  %v397_v41 = vpop.f32.mrb[41].mxu0  ;;  %777 = vadd.xlane.f32.xlu1 %v2438_v7 }
 0x19f   :  { %v2443_v42 = vadd.f32 %v2330_v34, %v396_v36 }
 0x1a0   :  { %v400_v29 = vpop.f32.mrb[42].mxu0 }
 0x1a1   :  { %v401_v45 = vadd.f32 %v2295_v8, %v400_v29  ;;  %v402_v47 = vpop.f32.mrb[43].mxu0  ;;  %779 = vadd.xlane.f32.xlu0 %v2443_v42 }
 0x1a3   :  { %v2448_v48 = vadd.f32 %v2328_v0, %v401_v45 }
 0x1a4   :  { %v405_v27 = vpop.f32.mrb[44].mxu0 }
 0x1a5   :  { %v406_v51 = vadd.f32 %v2295_v8, %v405_v27  ;;  %v407_v11 = vpop.f32.mrb[45].mxu0  ;;  %781 = vadd.xlane.f32.xlu1 %v2448_v48 }
 0x1a7   :  { %v2453_v54 = vadd.f32 %v2338_v40, %v406_v51 }
 0x1a8   :  { %v410_v34 = vpop.f32.mrb[46].mxu0 }
 0x1a9   :  { %v411_v57 = vadd.f32 %v2295_v8, %v410_v34  ;;  %v412_v9 = vpop.f32.mrb[47].mxu0  ;;  %783 = vadd.xlane.f32.xlu0 %v2453_v54 }
 0x1ab   :  { %v2458_v60 = vadd.f32 %v2336_v38, %v411_v57 }
 0x1ac   :  { %v415_v0 = vpop.f32.mrb[48].mxu0 }
 0x1ad   :  { %v416_v63 = vadd.f32 %v2295_v8, %v415_v0  ;;  %v417_v17 = vpop.f32.mrb[49].mxu0  ;;  %785 = vadd.xlane.f32.xlu1 %v2458_v60 }
 0x1af   :  { %v2463_v3 = vadd.f32 %v2346_v46, %v416_v63 }
 0x1b0   :  { %v420_v40 = vpop.f32.mrb[50].mxu0 }
 0x1b1   :  { %v421_v13 = vadd.f32 %v2295_v8, %v420_v40  ;;  %v422_v15 = vpop.f32.mrb[51].mxu0  ;;  %787 = vadd.xlane.f32.xlu0 %v2463_v3 }
 0x1b3   :  { %v2468_v18 = vadd.f32 %v2344_v44, %v421_v13 }
 0x1b4   :  { %v425_v38 = vpop.f32.mrb[52].mxu0 }
 0x1b5   :  { %v426_v24 = vadd.f32 %v2295_v8, %v425_v38  ;;  %v427_v23 = vpop.f32.mrb[53].mxu0  ;;  %789 = vadd.xlane.f32.xlu1 %v2468_v18 }
 0x1b7   :  { %v2473_v28 = vadd.f32 %v2354_v52, %v426_v24 }
 0x1b8   :  { %v430_v46 = vpop.f32.mrb[54].mxu0 }
 0x1b9   :  { %v431_v33 = vadd.f32 %v2295_v8, %v430_v46  ;;  %v432_v21 = vpop.f32.mrb[55].mxu0  ;;  %791 = vadd.xlane.f32.xlu0 %v2473_v28 }
 0x1bb   :  { %v2478_v36 = vadd.f32 %v2352_v50, %v431_v33 }
 0x1bc   :  { %v435_v44 = vpop.f32.mrb[56].mxu0 }
 0x1bd   :  { %v436_v41 = vadd.f32 %v2295_v8, %v435_v44  ;;  %v437_v29 = vpop.f32.mrb[57].mxu0  ;;  %793 = vadd.xlane.f32.xlu1 %v2478_v36 }
 0x1bf   :  { %v2483_v45 = vadd.f32 %v2362_v58, %v436_v41 }
 0x1c0   :  { %v440_v52 = vpop.f32.mrb[58].mxu0 }
 0x1c1   :  { %v441_v47 = vadd.f32 %v2295_v8, %v440_v52  ;;  %v442_v27 = vpop.f32.mrb[59].mxu0  ;;  %795 = vadd.xlane.f32.xlu0 %v2483_v45 }
 0x1c3   :  { %v2488_v51 = vadd.f32 %v2360_v56, %v441_v47 }
 0x1c4   :  { %v445_v50 = vpop.f32.mrb[60].mxu0 }
 0x1c5   :  { %v446_v11 = vadd.f32 %v2295_v8, %v445_v50  ;;  %v447_v34 = vpop.f32.mrb[61].mxu0  ;;  %797 = vadd.xlane.f32.xlu1 %v2488_v51 }
 0x1c7   :  { %v2493_v57 = vadd.f32 %v2371_v1, %v446_v11 }
 0x1c8   :  { %v450_v58 = vpop.f32.mrb[62].mxu0 }
 0x1c9   :  { %v451_v9 = vadd.f32 %v2295_v8, %v450_v58  ;;  %v452_v0 = vpop.f32.mrb[63].mxu0  ;;  %799 = vadd.xlane.f32.xlu0 %v2493_v57 }
 0x1cb   :  { %v2498_v63 = vadd.f32 %v2369_v62, %v451_v9 }
 0x1cc   :  { %v455_v56 = vpop.f32.mrb[64].mxu0 }
 0x1cd   :  { %v456_v17 = vadd.f32 %v2295_v8, %v455_v56  ;;  %v457_v40 = vpop.f32.mrb[65].mxu0  ;;  %801 = vadd.xlane.f32.xlu1 %v2498_v63 }
 0x1cf   :  { %v2503_v13 = vadd.f32 %v2380_v16, %v456_v17 }
 0x1d0   :  { %v460_v1 = vpop.f32.mrb[66].mxu0 }
 0x1d1   :  { %v461_v15 = vadd.f32 %v2295_v8, %v460_v1  ;;  %v462_v38 = vpop.f32.mrb[67].mxu0  ;;  %803 = vadd.xlane.f32.xlu0 %v2503_v13 }
 0x1d2   :  { %v1280_v38 = vld [vmem:[#allocation7] sm:$0xff] }
 0x1d3   :  { %v2508_v24 = vadd.f32 %v2378_v12, %v461_v15 }
 0x1d4   :  { %v465_v62 = vpop.f32.mrb[68].mxu0 }
 0x1d5   :  { %v466_v23 = vadd.f32 %v2295_v8, %v465_v62  ;;  %v467_v46 = vpop.f32.mrb[69].mxu0  ;;  %805 = vadd.xlane.f32.xlu1 %v2508_v24 }
 0x1d7   :  { %v2513_v33 = vadd.f32 %v2389_v25, %v466_v23 }
 0x1d8   :  { %v470_v16 = vpop.f32.mrb[70].mxu0 }
 0x1d9   :  { %v471_v21 = vadd.f32 %v2295_v8, %v470_v16  ;;  %v472_v44 = vpop.f32.mrb[71].mxu0  ;;  %807 = vadd.xlane.f32.xlu0 %v2513_v33 }
 0x1da   :  { %v1283_v44 = vld [vmem:[#allocation7 + $0x18] sm:$0xff] }
 0x1db   :  { %v2518_v41 = vadd.f32 %v2387_v22, %v471_v21  ;;  %v1282_v21 = vld [vmem:[#allocation7 + $0x10] sm:$0xff] }
 0x1dc   :  { %v475_v12 = vpop.f32.mrb[72].mxu0 }
 0x1dd   :  { %v476_v29 = vadd.f32 %v2295_v8, %v475_v12  ;;  %v477_v52 = vpop.f32.mrb[73].mxu0  ;;  %809 = vadd.xlane.f32.xlu1 %v2518_v41  ;;  %v1985_v12 = vpack.c.bf16 %v1283_v44, %v1282_v21  ;;  %v1291_v21 = vld [vmem:[#allocation7 + $0x58] sm:$0xff] }
 0x1de   :  { %v740_v47 = vpop.xlane.xlu0 %739 }
 0x1df   :  { %v2523_v27 = vadd.f32 %v2398_v35, %v476_v29  ;;  %v816_v25 = vmul.f32 0.0078125, %v740_v47 }
 0x1e0   :  { %v480_v50 = vpop.f32.mrb[74].mxu0 }
 0x1e1   :  { %v2526_v11 = vsub.f32 %v2302_v14, %v816_v25  ;;  %v481_v34 = vadd.f32 %v2295_v8, %v480_v50  ;;  %v482_v58 = vpop.f32.mrb[75].mxu0  ;;  %811 = vadd.xlane.f32.xlu0 %v2523_v27  ;;  %v1284_v25 = vld [vmem:[#allocation7 + $0x20] sm:$0xff]  ;;  %v1285_v50 = vld [vmem:[#allocation7 + $0x28] sm:$0xff] }
 0x1e2   :  { %v742_v22 = vpop.xlane.xlu0 %741 }
 0x1e3   :  { %v817_v9 = vmul.f32 0.0078125, %v742_v22  ;;  %v2531_v0 = vadd.f32 %v2396_v31, %v481_v34  ;;  %v892_v56 = vmul.f32 %v2526_v11, %v2526_v11  ;;  %v1989_v34 = vpack.c.bf16 %v1285_v50, %v1284_v25  ;;  %v1293_v25 = vld [vmem:[#allocation7 + $0x68] sm:$0xff] }
 0x1e5   :  { %v2536_v35 = vsub.f32 %v2310_v20, %v817_v9  ;;  %813 = vadd.xlane.f32.xlu1 %v2531_v0  ;;  %930 = vadd.xlane.f32.xlu0 %v892_v56  ;;  %v1281_v20 = vld [vmem:[#allocation7 + $0x8] sm:$0xff]  ;;  %v1286_v56 = vld [vmem:[#allocation7 + $0x30] sm:$0xff] }
 0x1e6   :  { %v744_v14 = vpop.xlane.xlu1 %743  ;;  %v1981_v62 = vpack.c.bf16 %v1281_v20, %v1280_v38  ;;  %v1289_v38 = vld [vmem:[#allocation7 + $0x48] sm:$0xff] }
 0x1e7   :  { %v818_v17 = vmul.f32 0.0078125, %v744_v14  ;;  %v893_v8 = vmul.f32 %v2536_v35, %v2536_v35  ;;  %v1287_v14 = vld [vmem:[#allocation7 + $0x38] sm:$0xff] }
 0x1e8   :  { %1982 = vmatprep.subr.bf16.mxu1 %v1981_v62 }
 0x1e9   :  { %v2542_v40 = vsub.f32 %v2318_v26, %v818_v17  ;;  %932 = vadd.xlane.f32.xlu1 %v893_v8  ;;  %1984 = vmatpush3.bf16.msra.mxu1 %v1981_v62  ;;  %v1993_v17 = vpack.c.bf16 %v1287_v14, %v1286_v56  ;;  %v1295_v56 = vld [vmem:[#allocation7 + $0x78] sm:$0xff] }
 0x1ea   :  { %v746_v31 = vpop.xlane.xlu1 %745  ;;  %1986 = vmatprep.subr.bf16.mxu1 %v1985_v12 }
 0x1eb   :  { %v819_v1 = vmul.f32 0.0078125, %v746_v31  ;;  %v894_v15 = vmul.f32 %v2542_v40, %v2542_v40 }
 0x1ed   :  { %v2547_v23 = vsub.f32 %v2326_v32, %v819_v1  ;;  %934 = vadd.xlane.f32.xlu0 %v894_v15  ;;  %1988 = vmatpush3.bf16.msra.mxu1 %v1985_v12  ;;  %v1288_v15 = vld [vmem:[#allocation7 + $0x40] sm:$0xff] }
 0x1ee   :  { %v748_v46 = vpop.xlane.xlu0 %747  ;;  %1990 = vmatprep.subr.bf16.mxu1 %v1989_v34  ;;  %v1997_v20 = vpack.c.bf16 %v1289_v38, %v1288_v15 }
 0x1ef   :  { %v820_v16 = vmul.f32 0.0078125, %v748_v46  ;;  %v895_v26 = vmul.f32 %v2547_v23, %v2547_v23 }
 0x1f1   :  { %v2552_v29 = vsub.f32 %v2334_v37, %v820_v16  ;;  %936 = vadd.xlane.f32.xlu1 %v895_v26  ;;  %1992 = vmatpush3.bf16.msra.mxu1 %v1989_v34  ;;  %v1290_v26 = vld [vmem:[#allocation7 + $0x50] sm:$0xff] }
 0x1f2   :  { %v750_v52 = vpop.xlane.xlu1 %749  ;;  %1994 = vmatprep.subr.bf16.mxu1 %v1993_v17  ;;  %v2001_v44 = vpack.c.bf16 %v1291_v21, %v1290_v26 }
 0x1f3   :  { %v821_v47 = vmul.f32 0.0078125, %v750_v52  ;;  %v896_v32 = vmul.f32 %v2552_v29, %v2552_v29 }
 0x1f5   :  { %v2557_v58 = vsub.f32 %v2342_v43, %v821_v47  ;;  %938 = vadd.xlane.f32.xlu0 %v896_v32  ;;  %1996 = vmatpush3.bf16.msra.mxu1 %v1993_v17  ;;  %v1292_v32 = vld [vmem:[#allocation7 + $0x60] sm:$0xff] }
 0x1f6   :  { %v752_v22 = vpop.xlane.xlu0 %751  ;;  %1998 = vmatprep.subr.bf16.mxu1 %v1997_v20  ;;  %v2005_v50 = vpack.c.bf16 %v1293_v25, %v1292_v32 }
 0x1f7   :  { %v822_v9 = vmul.f32 0.0078125, %v752_v22  ;;  %v897_v37 = vmul.f32 %v2557_v58, %v2557_v58 }
 0x1f9   :  { %v2562_v8 = vsub.f32 %v2350_v49, %v822_v9  ;;  %940 = vadd.xlane.f32.xlu1 %v897_v37  ;;  %2000 = vmatpush3.bf16.msra.mxu1 %v1997_v20  ;;  %v1294_v37 = vld [vmem:[#allocation7 + $0x70] sm:$0xff] }
 0x1fa   :  { %v754_v31 = vpop.xlane.xlu1 %753  ;;  %2002 = vmatprep.subr.bf16.mxu1 %v2001_v44  ;;  %v2009_v14 = vpack.c.bf16 %v1295_v56, %v1294_v37 }
 0x1fb   :  { %v823_v1 = vmul.f32 0.0078125, %v754_v31  ;;  %v898_v43 = vmul.f32 %v2562_v8, %v2562_v8 }
 0x1fd   :  { %v2567_v62 = vsub.f32 %v2358_v55, %v823_v1  ;;  %942 = vadd.xlane.f32.xlu0 %v898_v43  ;;  %2004 = vmatpush3.bf16.msra.mxu1 %v2001_v44 }
 0x1fe   :  { %v756_v46 = vpop.xlane.xlu0 %755  ;;  %2006 = vmatprep.subr.bf16.mxu1 %v2005_v50 }
 0x1ff   :  { %v824_v16 = vmul.f32 0.0078125, %v756_v46  ;;  %v899_v49 = vmul.f32 %v2567_v62, %v2567_v62 }
 0x201   :  { %v2572_v12 = vsub.f32 %v2367_v61, %v824_v16  ;;  %944 = vadd.xlane.f32.xlu1 %v899_v49  ;;  %2008 = vmatpush3.bf16.msra.mxu1 %v2005_v50 }
 0x202   :  { %v758_v52 = vpop.xlane.xlu1 %757  ;;  %2010 = vmatprep.subr.bf16.mxu1 %v2009_v14 }
 0x203   :  { %v825_v47 = vmul.f32 0.0078125, %v758_v52  ;;  %v900_v55 = vmul.f32 %v2572_v12, %v2572_v12 }
 0x205   :  { %v2577_v34 = vsub.f32 %v2376_v10, %v825_v47  ;;  %946 = vadd.xlane.f32.xlu0 %v900_v55  ;;  %2012 = vmatpush3.bf16.msra.mxu1 %v2009_v14 }
 0x206   :  { %v760_v22 = vpop.xlane.xlu0 %759 }
 0x207   :  { %v826_v9 = vmul.f32 0.0078125, %v760_v22  ;;  %v901_v61 = vmul.f32 %v2577_v34, %v2577_v34 }
 0x209   :  { %v2582_v17 = vsub.f32 %v2385_v19, %v826_v9  ;;  %948 = vadd.xlane.f32.xlu1 %v901_v61 }
 0x20a   :  { %v762_v31 = vpop.xlane.xlu1 %761 }
 0x20b   :  { %v827_v1 = vmul.f32 0.0078125, %v762_v31  ;;  %v902_v10 = vmul.f32 %v2582_v17, %v2582_v17 }
 0x20d   :  { %v2587_v43 = vsub.f32 %v2394_v30, %v827_v1  ;;  %950 = vadd.xlane.f32.xlu0 %v902_v10 }
 0x20e   :  { %v764_v15 = vpop.xlane.xlu0 %763 }
 0x20f   :  { %v828_v38 = vmul.f32 0.0078125, %v764_v15  ;;  %v903_v20 = vmul.f32 %v2587_v43, %v2587_v43 }
 0x211   :  { %v2592_v19 = vsub.f32 %v2403_v39, %v828_v38  ;;  %952 = vadd.xlane.f32.xlu1 %v903_v20 }
 0x212   :  { %v766_v46 = vpop.xlane.xlu1 %765 }
 0x213   :  { %v829_v16 = vmul.f32 0.0078125, %v766_v46  ;;  %v904_v49 = vmul.f32 %v2592_v19, %v2592_v19 }
 0x215   :  { %v2597_v26 = vsub.f32 %v2408_v6, %v829_v16  ;;  %954 = vadd.xlane.f32.xlu0 %v904_v49 }
 0x216   :  { %v768_v30 = vpop.xlane.xlu0 %767 }
 0x217   :  { %v830_v21 = vmul.f32 0.0078125, %v768_v30  ;;  %v905_v44 = vmul.f32 %v2597_v26, %v2597_v26 }
 0x219   :  { %v2602_v52 = vsub.f32 %v2413_v53, %v830_v21  ;;  %956 = vadd.xlane.f32.xlu1 %v905_v44 }
 0x21a   :  { %v770_v39 = vpop.xlane.xlu1 %769 }
 0x21b   :  { %v831_v47 = vmul.f32 0.0078125, %v770_v39  ;;  %v906_v55 = vmul.f32 %v2602_v52, %v2602_v52 }
 0x21d   :  { %v2607_v32 = vsub.f32 %v2418_v59, %v831_v47  ;;  %958 = vadd.xlane.f32.xlu0 %v906_v55 }
 0x21e   :  { %v772_v6 = vpop.xlane.xlu0 %771 }
 0x21f   :  { %v832_v25 = vmul.f32 0.0078125, %v772_v6  ;;  %v907_v50 = vmul.f32 %v2607_v32, %v2607_v32 }
 0x221   :  { %v2612_v22 = vsub.f32 %v2423_v2, %v832_v25  ;;  %960 = vadd.xlane.f32.xlu1 %v907_v50 }
 0x222   :  { %v774_v53 = vpop.xlane.xlu1 %773 }
 0x223   :  { %v833_v9 = vmul.f32 0.0078125, %v774_v53  ;;  %v908_v61 = vmul.f32 %v2612_v22, %v2612_v22 }
 0x225   :  { %v2617_v37 = vsub.f32 %v2428_v5, %v833_v9  ;;  %962 = vadd.xlane.f32.xlu0 %v908_v61 }
 0x226   :  { %v776_v59 = vpop.xlane.xlu0 %775 }
 0x227   :  { %v834_v56 = vmul.f32 0.0078125, %v776_v59  ;;  %v909_v14 = vmul.f32 %v2617_v37, %v2617_v37 }
 0x229   :  { %v2622_v31 = vsub.f32 %v2433_v4, %v834_v56  ;;  %964 = vadd.xlane.f32.xlu1 %v909_v14 }
 0x22a   :  { %v778_v2 = vpop.xlane.xlu1 %777 }
 0x22b   :  { %v835_v1 = vmul.f32 0.0078125, %v778_v2  ;;  %v910_v10 = vmul.f32 %v2622_v31, %v2622_v31 }
 0x22d   :  { %v2627_v15 = vsub.f32 %v2438_v7, %v835_v1  ;;  %966 = vadd.xlane.f32.xlu0 %v910_v10 }
 0x22e   :  { %v780_v5 = vpop.xlane.xlu0 %779 }
 0x22f   :  { %v836_v38 = vmul.f32 0.0078125, %v780_v5  ;;  %v911_v20 = vmul.f32 %v2627_v15, %v2627_v15 }
 0x231   :  { %v2632_v46 = vsub.f32 %v2443_v42, %v836_v38  ;;  %968 = vadd.xlane.f32.xlu1 %v911_v20 }
 0x232   :  { %v782_v4 = vpop.xlane.xlu1 %781 }
 0x233   :  { %v837_v16 = vmul.f32 0.0078125, %v782_v4  ;;  %v912_v49 = vmul.f32 %v2632_v46, %v2632_v46 }
 0x235   :  { %v2637_v30 = vsub.f32 %v2448_v48, %v837_v16  ;;  %970 = vadd.xlane.f32.xlu0 %v912_v49 }
 0x236   :  { %v784_v7 = vpop.xlane.xlu0 %783 }
 0x237   :  { %v838_v21 = vmul.f32 0.0078125, %v784_v7  ;;  %v913_v44 = vmul.f32 %v2637_v30, %v2637_v30 }
 0x239   :  { %v2642_v39 = vsub.f32 %v2453_v54, %v838_v21  ;;  %972 = vadd.xlane.f32.xlu1 %v913_v44 }
 0x23a   :  { %v786_v42 = vpop.xlane.xlu1 %785 }
 0x23b   :  { %v839_v47 = vmul.f32 0.0078125, %v786_v42  ;;  %v914_v55 = vmul.f32 %v2642_v39, %v2642_v39 }
 0x23d   :  { %v2647_v6 = vsub.f32 %v2458_v60, %v839_v47  ;;  %974 = vadd.xlane.f32.xlu0 %v914_v55 }
 0x23e   :  { %v788_v48 = vpop.xlane.xlu0 %787 }
 0x23f   :  { %v840_v25 = vmul.f32 0.0078125, %v788_v48  ;;  %v915_v50 = vmul.f32 %v2647_v6, %v2647_v6 }
 0x241   :  { %v2652_v53 = vsub.f32 %v2463_v3, %v840_v25  ;;  %976 = vadd.xlane.f32.xlu1 %v915_v50 }
 0x242   :  { %v790_v54 = vpop.xlane.xlu1 %789 }
 0x243   :  { %v841_v9 = vmul.f32 0.0078125, %v790_v54  ;;  %v916_v61 = vmul.f32 %v2652_v53, %v2652_v53 }
 0x245   :  { %v2657_v59 = vsub.f32 %v2468_v18, %v841_v9  ;;  %978 = vadd.xlane.f32.xlu0 %v916_v61 }
 0x246   :  { %v792_v60 = vpop.xlane.xlu0 %791 }
 0x247   :  { %v842_v56 = vmul.f32 0.0078125, %v792_v60  ;;  %v917_v14 = vmul.f32 %v2657_v59, %v2657_v59 }
 0x249   :  { %v2662_v2 = vsub.f32 %v2473_v28, %v842_v56  ;;  %980 = vadd.xlane.f32.xlu1 %v917_v14 }
 0x24a   :  { %v794_v3 = vpop.xlane.xlu1 %793 }
 0x24b   :  { %v843_v1 = vmul.f32 0.0078125, %v794_v3  ;;  %v918_v10 = vmul.f32 %v2662_v2, %v2662_v2 }
 0x24d   :  { %v2667_v5 = vsub.f32 %v2478_v36, %v843_v1  ;;  %982 = vadd.xlane.f32.xlu0 %v918_v10 }
 0x24e   :  { %v796_v18 = vpop.xlane.xlu0 %795 }
 0x24f   :  { %v844_v38 = vmul.f32 0.0078125, %v796_v18  ;;  %v919_v20 = vmul.f32 %v2667_v5, %v2667_v5 }
 0x251   :  { %v2672_v4 = vsub.f32 %v2483_v45, %v844_v38  ;;  %984 = vadd.xlane.f32.xlu1 %v919_v20 }
 0x252   :  { %v798_v28 = vpop.xlane.xlu1 %797 }
 0x253   :  { %v845_v16 = vmul.f32 0.0078125, %v798_v28  ;;  %v920_v49 = vmul.f32 %v2672_v4, %v2672_v4 }
 0x255   :  { %v2677_v7 = vsub.f32 %v2488_v51, %v845_v16  ;;  %986 = vadd.xlane.f32.xlu0 %v920_v49 }
 0x256   :  { %v800_v36 = vpop.xlane.xlu0 %799 }
 0x257   :  { %v846_v21 = vmul.f32 0.0078125, %v800_v36  ;;  %v921_v44 = vmul.f32 %v2677_v7, %v2677_v7 }
 0x259   :  { %v2682_v42 = vsub.f32 %v2493_v57, %v846_v21  ;;  %988 = vadd.xlane.f32.xlu1 %v921_v44 }
 0x25a   :  { %v802_v45 = vpop.xlane.xlu1 %801 }
 0x25b   :  { %v847_v47 = vmul.f32 0.0078125, %v802_v45  ;;  %v922_v55 = vmul.f32 %v2682_v42, %v2682_v42 }
 0x25d   :  { %v2687_v48 = vsub.f32 %v2498_v63, %v847_v47  ;;  %990 = vadd.xlane.f32.xlu0 %v922_v55 }
 0x25e   :  { %v804_v51 = vpop.xlane.xlu0 %803 }
 0x25f   :  { %v848_v25 = vmul.f32 0.0078125, %v804_v51  ;;  %v923_v50 = vmul.f32 %v2687_v48, %v2687_v48 }
 0x261   :  { %v2692_v54 = vsub.f32 %v2503_v13, %v848_v25  ;;  %992 = vadd.xlane.f32.xlu1 %v923_v50 }
 0x262   :  { %v806_v57 = vpop.xlane.xlu1 %805 }
 0x263   :  { %v849_v9 = vmul.f32 0.0078125, %v806_v57  ;;  %v924_v61 = vmul.f32 %v2692_v54, %v2692_v54 }
 0x265   :  { %v2697_v60 = vsub.f32 %v2508_v24, %v849_v9  ;;  %994 = vadd.xlane.f32.xlu0 %v924_v61 }
 0x266   :  { %v808_v63 = vpop.xlane.xlu0 %807 }
 0x267   :  { %v850_v56 = vmul.f32 0.0078125, %v808_v63  ;;  %v925_v14 = vmul.f32 %v2697_v60, %v2697_v60  ;;  %v2724_v63 = vld [vmem:[%s2905_s2 + $0x1] ss:$0 sm:$0xff] }
 0x269   :  { %v2702_v3 = vsub.f32 %v2513_v33, %v850_v56  ;;  %996 = vadd.xlane.f32.xlu1 %v925_v14 }
 0x26a   :  { %v810_v13 = vpop.xlane.xlu1 %809 }
 0x26b   :  { %v851_v1 = vmul.f32 0.0078125, %v810_v13  ;;  %v926_v10 = vmul.f32 %v2702_v3, %v2702_v3 }
 0x26d   :  { %v2707_v18 = vsub.f32 %v2518_v41, %v851_v1  ;;  %998 = vadd.xlane.f32.xlu0 %v926_v10  ;;  %v2730_v1 = vld [vmem:[%s2905_s2 + $0x2] ss:$0 sm:$0xff] }
 0x26e   :  { %v812_v24 = vpop.xlane.xlu0 %811 }
 0x26f   :  { %v852_v38 = vmul.f32 0.0078125, %v812_v24  ;;  %v927_v20 = vmul.f32 %v2707_v18, %v2707_v18 }
 0x271   :  { %v2712_v28 = vsub.f32 %v2523_v27, %v852_v38  ;;  %1000 = vadd.xlane.f32.xlu1 %v927_v20 }
 0x272   :  { %v814_v33 = vpop.xlane.xlu1 %813  ;;  %v931_v16 = vpop.xlane.xlu0 %930 }
 0x273   :  { %v853_v49 = vmul.f32 0.0078125, %v814_v33  ;;  %v1006_v36 = vmul.f32 0.0078125, %v931_v16  ;;  %v928_v21 = vmul.f32 %v2712_v28, %v2712_v28 }
 0x275   :  { %v2717_v41 = vsub.f32 %v2531_v0, %v853_v49  ;;  %v1044_v44 = vadd.f32 1e-05, %v1006_v36  ;;  %1002 = vadd.xlane.f32.xlu0 %v928_v21 }
 0x276   :  { %v933_v45 = vpop.xlane.xlu1 %932 }
 0x277   :  { %2022 = vrsqrt.f32 %v1044_v44  ;;  %v1007_v47 = vmul.f32 0.0078125, %v933_v45  ;;  %v929_v27 = vmul.f32 %v2717_v41, %v2717_v41 }
 0x279   :  { %v1045_v55 = vadd.f32 1e-05, %v1007_v47  ;;  %1004 = vadd.xlane.f32.xlu1 %v929_v27 }
 0x27a   :  { %v935_v51 = vpop.xlane.xlu0 %934 }
 0x27b   :  { %2024 = vrsqrt.f32 %v1045_v55  ;;  %v1008_v25 = vmul.f32 0.0078125, %v935_v51 }
 0x27d   :  { %v1046_v50 = vadd.f32 1e-05, %v1008_v25 }
 0x27e   :  { %v937_v57 = vpop.xlane.xlu1 %936 }
 0x27f   :  { %2026 = vrsqrt.f32 %v1046_v50  ;;  %v1009_v9 = vmul.f32 0.0078125, %v937_v57 }
 0x281   :  { %v2023_v61 = vpop.eup %2022  ;;  %v1047_v0 = vadd.f32 1e-05, %v1009_v9 }
 0x282   :  { %v939_v56 = vpop.xlane.xlu0 %938  ;;  %v1120_v14 = vmul.f32 %v2023_v61, %v2526_v11 }
 0x283   :  { %2028 = vrsqrt.f32 %v1047_v0  ;;  %v1010_v13 = vmul.f32 0.0078125, %v939_v56 }
 0x284   :  { %v1162_v10 = vmul.f32 %v2724_v63, %v1120_v14 }
 0x285   :  { %v2025_v24 = vpop.eup %2024  ;;  %v1048_v38 = vadd.f32 1e-05, %v1010_v13 }
 0x286   :  { %v1121_v20 = vmul.f32 %v2025_v24, %v2536_v35  ;;  %v941_v33 = vpop.xlane.xlu1 %940  ;;  %v1204_v16 = vadd.f32 %v2730_v1, %v1162_v10 }
 0x287   :  { %2030 = vrsqrt.f32 %v1048_v38  ;;  %v1011_v49 = vmul.f32 0.0078125, %v941_v33 }
 0x288   :  { %v1242_v36 = vmax.f32 %v1204_v16, 0.0  ;;  %v1163_v11 = vmul.f32 %v2724_v63, %v1121_v20 }
 0x289   :  { %v2027_v21 = vpop.eup %2026  ;;  %v1049_v44 = vadd.f32 1e-05, %v1011_v49 }
 0x28a   :  { %1844 = vmatprep.mubr.f32.mxu1 %v1242_v36  ;;  %v943_v45 = vpop.xlane.xlu0 %942  ;;  %v1205_v47 = vadd.f32 %v2730_v1, %v1163_v11  ;;  %v1122_v27 = vmul.f32 %v2027_v21, %v2542_v40 }
 0x28b   :  { %2032 = vrsqrt.f32 %v1049_v44  ;;  %v1012_v55 = vmul.f32 0.0078125, %v943_v45 }
 0x28c   :  { %v1243_v51 = vmax.f32 %v1205_v47, 0.0  ;;  %v1164_v35 = vmul.f32 %v2724_v63, %v1122_v27 }
 0x28d   :  { %v2029_v25 = vpop.eup %2028  ;;  %v1050_v50 = vadd.f32 1e-05, %v1012_v55 }
 0x28e   :  { %v945_v57 = vpop.xlane.xlu1 %944  ;;  %1845 = vmatmul.mubr.f32.vlgmr.msra.gmra.mrb[38].mxu1 %v1243_v51  ;;  %v1206_v9 = vadd.f32 %v2730_v1, %v1164_v35  ;;  %v1123_v61 = vmul.f32 %v2029_v25, %v2547_v23 }
 0x28f   :  { %2034 = vrsqrt.f32 %v1050_v50  ;;  %v1013_v0 = vmul.f32 0.0078125, %v945_v57 }
 0x290   :  { %v1244_v56 = vmax.f32 %v1206_v9, 0.0  ;;  %v1165_v14 = vmul.f32 %v2724_v63, %v1123_v61 }
 0x291   :  { %v2031_v13 = vpop.eup %2030  ;;  %v1051_v40 = vadd.f32 1e-05, %v1013_v0 }
 0x292   :  { %1847 = vmatprep.mubr.f32.mxu1 %v1244_v56  ;;  %v947_v10 = vpop.xlane.xlu0 %946  ;;  %v1207_v24 = vadd.f32 %v2730_v1, %v1165_v14  ;;  %v1124_v38 = vmul.f32 %v2031_v13, %v2552_v29 }
 0x293   :  { %2036 = vrsqrt.f32 %v1051_v40  ;;  %v1014_v20 = vmul.f32 0.0078125, %v947_v10 }
 0x294   :  { %v1245_v33 = vmax.f32 %v1207_v24, 0.0  ;;  %v1166_v16 = vmul.f32 %v2724_v63, %v1124_v38 }
 0x295   :  { %v2033_v49 = vpop.eup %2032  ;;  %v1052_v23 = vadd.f32 1e-05, %v1014_v20 }
 0x296   :  { %v949_v36 = vpop.xlane.xlu1 %948  ;;  %1848 = vmatmul.mubr.f32.gmra.mrb[40].mxu1 %v1245_v33  ;;  %v1208_v11 = vadd.f32 %v2730_v1, %v1166_v16  ;;  %v1125_v21 = vmul.f32 %v2033_v49, %v2557_v58 }
 0x297   :  { %2038 = vrsqrt.f32 %v1052_v23  ;;  %v1015_v44 = vmul.f32 0.0078125, %v949_v36 }
 0x298   :  { %v1246_v45 = vmax.f32 %v1208_v11, 0.0  ;;  %v1167_v47 = vmul.f32 %v2724_v63, %v1125_v21 }
 0x299   :  { %v2035_v27 = vpop.eup %2034  ;;  %v1053_v29 = vadd.f32 1e-05, %v1015_v44 }
 0x29a   :  { %1850 = vmatprep.mubr.f32.mxu1 %v1246_v45  ;;  %v951_v55 = vpop.xlane.xlu0 %950  ;;  %v1209_v51 = vadd.f32 %v2730_v1, %v1167_v47  ;;  %v1126_v35 = vmul.f32 %v2035_v27, %v2562_v8 }
 0x29b   :  { %2040 = vrsqrt.f32 %v1053_v29  ;;  %v1016_v25 = vmul.f32 0.0078125, %v951_v55 }
 0x29c   :  { %v1247_v50 = vmax.f32 %v1209_v51, 0.0  ;;  %v1168_v57 = vmul.f32 %v2724_v63, %v1126_v35 }
 0x29d   :  { %v2037_v9 = vpop.eup %2036  ;;  %v1054_v58 = vadd.f32 1e-05, %v1016_v25 }
 0x29e   :  { %v953_v61 = vpop.xlane.xlu1 %952  ;;  %1851 = vmatmul.mubr.f32.gmra.mrb[42].mxu1 %v1247_v50  ;;  %v1210_v0 = vadd.f32 %v2730_v1, %v1168_v57  ;;  %v1127_v56 = vmul.f32 %v2037_v9, %v2567_v62 }
 0x29f   :  { %2042 = vrsqrt.f32 %v1054_v58  ;;  %v1017_v14 = vmul.f32 0.0078125, %v953_v61 }
 0x2a0   :  { %v1248_v13 = vmax.f32 %v1210_v0, 0.0  ;;  %v1169_v40 = vmul.f32 %v2724_v63, %v1127_v56 }
 0x2a1   :  { %v2039_v10 = vpop.eup %2038  ;;  %v1055_v8 = vadd.f32 1e-05, %v1017_v14 }
 0x2a2   :  { %1853 = vmatprep.mubr.f32.mxu1 %v1248_v13  ;;  %v955_v24 = vpop.xlane.xlu0 %954  ;;  %v1211_v38 = vadd.f32 %v2730_v1, %v1169_v40  ;;  %v1128_v20 = vmul.f32 %v2039_v10, %v2572_v12 }
 0x2a3   :  { %2044 = vrsqrt.f32 %v1055_v8  ;;  %v1018_v33 = vmul.f32 0.0078125, %v955_v24 }
 0x2a4   :  { %v1249_v16 = vmax.f32 %v1211_v38, 0.0  ;;  %v1170_v49 = vmul.f32 %v2724_v63, %v1128_v20 }
 0x2a5   :  { %v2041_v23 = vpop.eup %2040  ;;  %v1056_v62 = vadd.f32 1e-05, %v1018_v33 }
 0x2a6   :  { %v957_v36 = vpop.xlane.xlu1 %956  ;;  %1854 = vmatmul.mubr.f32.gmra.mrb[44].mxu1 %v1249_v16  ;;  %v1212_v11 = vadd.f32 %v2730_v1, %v1170_v49  ;;  %v1129_v21 = vmul.f32 %v2041_v23, %v2577_v34 }
 0x2a7   :  { %2046 = vrsqrt.f32 %v1056_v62  ;;  %v1019_v44 = vmul.f32 0.0078125, %v957_v36 }
 0x2a8   :  { %v1250_v45 = vmax.f32 %v1212_v11, 0.0  ;;  %v1171_v47 = vmul.f32 %v2724_v63, %v1129_v21 }
 0x2a9   :  { %v2043_v27 = vpop.eup %2042  ;;  %v1057_v12 = vadd.f32 1e-05, %v1019_v44 }
 0x2aa   :  { %1856 = vmatprep.mubr.f32.mxu1 %v1250_v45  ;;  %v959_v29 = vpop.xlane.xlu0 %958  ;;  %v1213_v55 = vadd.f32 %v2730_v1, %v1171_v47  ;;  %v1130_v51 = vmul.f32 %v2043_v27, %v2582_v17 }
 0x2ab   :  { %2048 = vrsqrt.f32 %v1057_v12  ;;  %v1020_v35 = vmul.f32 0.0078125, %v959_v29 }
 0x2ac   :  { %v1251_v25 = vmax.f32 %v1213_v55, 0.0  ;;  %v1172_v50 = vmul.f32 %v2724_v63, %v1130_v51 }
 0x2ad   :  { %v2045_v57 = vpop.eup %2044  ;;  %v1058_v34 = vadd.f32 1e-05, %v1020_v35 }
 0x2ae   :  { %v961_v9 = vpop.xlane.xlu1 %960  ;;  %1857 = vmatmul.mubr.f32.gmra.mrb[46].mxu1 %v1251_v25  ;;  %v1214_v58 = vadd.f32 %v2730_v1, %v1172_v50  ;;  %v1131_v61 = vmul.f32 %v2045_v57, %v2587_v43 }
 0x2af   :  { %2050 = vrsqrt.f32 %v1058_v34  ;;  %v1021_v0 = vmul.f32 0.0078125, %v961_v9 }
 0x2b0   :  { %v1252_v56 = vmax.f32 %v1214_v58, 0.0  ;;  %v1173_v14 = vmul.f32 %v2724_v63, %v1131_v61 }
 0x2b1   :  { %v2047_v13 = vpop.eup %2046  ;;  %v1059_v17 = vadd.f32 1e-05, %v1021_v0 }
 0x2b2   :  { %1859 = vmatprep.mubr.f32.mxu1 %v1252_v56  ;;  %v963_v40 = vpop.xlane.xlu0 %962  ;;  %v1215_v10 = vadd.f32 %v2730_v1, %v1173_v14  ;;  %v1132_v8 = vmul.f32 %v2047_v13, %v2592_v19 }
 0x2b3   :  { %2052 = vrsqrt.f32 %v1059_v17  ;;  %v1022_v24 = vmul.f32 0.0078125, %v963_v40 }
 0x2b4   :  { %v1253_v38 = vmax.f32 %v1215_v10, 0.0  ;;  %v1174_v20 = vmul.f32 %v2724_v63, %v1132_v8 }
 0x2b5   :  { %v2049_v33 = vpop.eup %2048  ;;  %v1060_v43 = vadd.f32 1e-05, %v1022_v24 }
 0x2b6   :  { %v965_v16 = vpop.xlane.xlu1 %964  ;;  %1860 = vmatmul.mubr.f32.gmra.mrb[48].mxu1 %v1253_v38  ;;  %v1216_v49 = vadd.f32 %v2730_v1, %v1174_v20  ;;  %v1133_v23 = vmul.f32 %v2049_v33, %v2597_v26 }
 0x2b7   :  { %2054 = vrsqrt.f32 %v1060_v43  ;;  %v1023_v62 = vmul.f32 0.0078125, %v965_v16 }
 0x2b8   :  { %v1254_v36 = vmax.f32 %v1216_v49, 0.0  ;;  %v1175_v11 = vmul.f32 %v2724_v63, %v1133_v23 }
 0x2b9   :  { %v2051_v21 = vpop.eup %2050  ;;  %v1061_v19 = vadd.f32 1e-05, %v1023_v62 }
 0x2ba   :  { %1862 = vmatprep.mubr.f32.mxu1 %v1254_v36  ;;  %v967_v44 = vpop.xlane.xlu0 %966  ;;  %v1217_v45 = vadd.f32 %v2730_v1, %v1175_v11  ;;  %v1134_v47 = vmul.f32 %v2051_v21, %v2602_v52 }
 0x2bb   :  { %2056 = vrsqrt.f32 %v1061_v19  ;;  %v1024_v27 = vmul.f32 0.0078125, %v967_v44 }
 0x2bc   :  { %v1255_v12 = vmax.f32 %v1217_v45, 0.0  ;;  %v1176_v29 = vmul.f32 %v2724_v63, %v1134_v47 }
 0x2bd   :  { %v2053_v55 = vpop.eup %2052  ;;  %v1062_v26 = vadd.f32 1e-05, %v1024_v27 }
 0x2be   :  { %v969_v51 = vpop.xlane.xlu1 %968  ;;  %1863 = vmatmul.mubr.f32.gmra.mrb[50].mxu1 %v1255_v12  ;;  %v1218_v35 = vadd.f32 %v2730_v1, %v1176_v29  ;;  %v1135_v25 = vmul.f32 %v2053_v55, %v2607_v32 }
 0x2bf   :  { %2058 = vrsqrt.f32 %v1062_v26  ;;  %v1025_v50 = vmul.f32 0.0078125, %v969_v51 }
 0x2c0   :  { %v1256_v57 = vmax.f32 %v1218_v35, 0.0  ;;  %v1177_v34 = vmul.f32 %v2724_v63, %v1135_v25 }
 0x2c1   :  { %v2055_v9 = vpop.eup %2054  ;;  %v1063_v52 = vadd.f32 1e-05, %v1025_v50 }
 0x2c2   :  { %1865 = vmatprep.mubr.f32.mxu1 %v1256_v57  ;;  %v971_v58 = vpop.xlane.xlu0 %970  ;;  %v1219_v61 = vadd.f32 %v2730_v1, %v1177_v34  ;;  %v1136_v0 = vmul.f32 %v2055_v9, %v2612_v22 }
 0x2c3   :  { %2060 = vrsqrt.f32 %v1063_v52  ;;  %v1026_v56 = vmul.f32 0.0078125, %v971_v58 }
 0x2c4   :  { %v1257_v14 = vmax.f32 %v1219_v61, 0.0  ;;  %v1178_v13 = vmul.f32 %v2724_v63, %v1136_v0 }
 0x2c5   :  { %v2057_v17 = vpop.eup %2056  ;;  %v1064_v32 = vadd.f32 1e-05, %v1026_v56 }
 0x2c6   :  { %v973_v40 = vpop.xlane.xlu1 %972  ;;  %1866 = vmatmul.mubr.f32.gmra.mrb[52].mxu1 %v1257_v14  ;;  %v1220_v10 = vadd.f32 %v2730_v1, %v1178_v13  ;;  %v1137_v8 = vmul.f32 %v2057_v17, %v2617_v37 }
 0x2c7   :  { %2062 = vrsqrt.f32 %v1064_v32  ;;  %v1027_v24 = vmul.f32 0.0078125, %v973_v40 }
 0x2c8   :  { %v1258_v38 = vmax.f32 %v1220_v10, 0.0  ;;  %v1179_v20 = vmul.f32 %v2724_v63, %v1137_v8 }
 0x2c9   :  { %v2059_v33 = vpop.eup %2058  ;;  %v1065_v22 = vadd.f32 1e-05, %v1027_v24 }
 0x2ca   :  { %1868 = vmatprep.mubr.f32.mxu1 %v1258_v38  ;;  %v975_v43 = vpop.xlane.xlu0 %974  ;;  %v1221_v16 = vadd.f32 %v2730_v1, %v1179_v20  ;;  %v1138_v49 = vmul.f32 %v2059_v33, %v2622_v31 }
 0x2cb   :  { %2064 = vrsqrt.f32 %v1065_v22  ;;  %v1028_v23 = vmul.f32 0.0078125, %v975_v43 }
 0x2cc   :  { %v1259_v62 = vmax.f32 %v1221_v16, 0.0  ;;  %v1180_v36 = vmul.f32 %v2724_v63, %v1138_v49 }
 0x2cd   :  { %v2061_v11 = vpop.eup %2060  ;;  %v1066_v37 = vadd.f32 1e-05, %v1028_v23 }
 0x2ce   :  { %v977_v21 = vpop.xlane.xlu1 %976  ;;  %1869 = vmatmul.mubr.f32.gmra.mrb[54].mxu1 %v1259_v62  ;;  %v1222_v19 = vadd.f32 %v2730_v1, %v1180_v36  ;;  %v1139_v44 = vmul.f32 %v2061_v11, %v2627_v15 }
 0x2cf   :  { %2066 = vrsqrt.f32 %v1066_v37  ;;  %v1029_v45 = vmul.f32 0.0078125, %v977_v21 }
 0x2d0   :  { %v1260_v47 = vmax.f32 %v1222_v19, 0.0  ;;  %v1181_v27 = vmul.f32 %v2724_v63, %v1139_v44 }
 0x2d1   :  { %v2063_v12 = vpop.eup %2062  ;;  %v1067_v31 = vadd.f32 1e-05, %v1029_v45 }
 0x2d2   :  { %1871 = vmatprep.mubr.f32.mxu1 %v1260_v47  ;;  %v979_v29 = vpop.xlane.xlu0 %978  ;;  %v1223_v55 = vadd.f32 %v2730_v1, %v1181_v27  ;;  %v1140_v26 = vmul.f32 %v2063_v12, %v2632_v46 }
 0x2d3   :  { %2068 = vrsqrt.f32 %v1067_v31  ;;  %v1030_v51 = vmul.f32 0.0078125, %v979_v29 }
 0x2d4   :  { %v1261_v35 = vmax.f32 %v1223_v55, 0.0  ;;  %v1182_v25 = vmul.f32 %v2724_v63, %v1140_v26 }
 0x2d5   :  { %v2065_v50 = vpop.eup %2064  ;;  %v1068_v15 = vadd.f32 1e-05, %v1030_v51 }
 0x2d6   :  { %v981_v57 = vpop.xlane.xlu1 %980  ;;  %1872 = vmatmul.mubr.f32.gmra.mrb[56].mxu1 %v1261_v35  ;;  %v1224_v34 = vadd.f32 %v2730_v1, %v1182_v25  ;;  %v1141_v9 = vmul.f32 %v2065_v50, %v2637_v30 }
 0x2d7   :  { %2070 = vrsqrt.f32 %v1068_v15  ;;  %v1031_v52 = vmul.f32 0.0078125, %v981_v57 }
 0x2d8   :  { %v1262_v58 = vmax.f32 %v1224_v34, 0.0  ;;  %v1183_v61 = vmul.f32 %v2724_v63, %v1141_v9 }
 0x2d9   :  { %v2067_v0 = vpop.eup %2066  ;;  %v1069_v46 = vadd.f32 1e-05, %v1031_v52 }
 0x2da   :  { %1874 = vmatprep.mubr.f32.mxu1 %v1262_v58  ;;  %v983_v56 = vpop.xlane.xlu0 %982  ;;  %v1225_v14 = vadd.f32 %v2730_v1, %v1183_v61  ;;  %v1142_v13 = vmul.f32 %v2067_v0, %v2642_v39 }
 0x2db   :  { %2072 = vrsqrt.f32 %v1069_v46  ;;  %v1032_v17 = vmul.f32 0.0078125, %v983_v56 }
 0x2dc   :  { %v1263_v32 = vmax.f32 %v1225_v14, 0.0  ;;  %v1184_v40 = vmul.f32 %v2724_v63, %v1142_v13 }
 0x2dd   :  { %v2069_v10 = vpop.eup %2068  ;;  %v1070_v30 = vadd.f32 1e-05, %v1032_v17 }
 0x2de   :  { %v985_v8 = vpop.xlane.xlu1 %984  ;;  %1875 = vmatmul.mubr.f32.gmra.mrb[58].mxu1 %v1263_v32  ;;  %v1226_v24 = vadd.f32 %v2730_v1, %v1184_v40  ;;  %v1143_v38 = vmul.f32 %v2069_v10, %v2647_v6 }
 0x2df   :  { %2074 = vrsqrt.f32 %v1070_v30  ;;  %v1033_v20 = vmul.f32 0.0078125, %v985_v8 }
 0x2e0   :  { %v1264_v33 = vmax.f32 %v1226_v24, 0.0  ;;  %v1185_v22 = vmul.f32 %v2724_v63, %v1143_v38 }
 0x2e1   :  { %v2071_v43 = vpop.eup %2070  ;;  %v1071_v39 = vadd.f32 1e-05, %v1033_v20 }
 0x2e2   :  { %1877 = vmatprep.mubr.f32.mxu1 %v1264_v33  ;;  %v987_v16 = vpop.xlane.xlu0 %986  ;;  %v1227_v49 = vadd.f32 %v2730_v1, %v1185_v22  ;;  %v1144_v23 = vmul.f32 %v2071_v43, %v2652_v53 }
 0x2e3   :  { %2076 = vrsqrt.f32 %v1071_v39  ;;  %v1034_v62 = vmul.f32 0.0078125, %v987_v16 }
 0x2e4   :  { %v1265_v36 = vmax.f32 %v1227_v49, 0.0  ;;  %v1186_v11 = vmul.f32 %v2724_v63, %v1144_v23 }
 0x2e5   :  { %v2073_v37 = vpop.eup %2072  ;;  %v1072_v6 = vadd.f32 1e-05, %v1034_v62 }
 0x2e6   :  { %v989_v21 = vpop.xlane.xlu1 %988  ;;  %1878 = vmatmul.mubr.f32.gmra.mrb[60].mxu1 %v1265_v36  ;;  %v1228_v19 = vadd.f32 %v2730_v1, %v1186_v11  ;;  %v1145_v44 = vmul.f32 %v2073_v37, %v2657_v59 }
 0x2e7   :  { %2078 = vrsqrt.f32 %v1072_v6  ;;  %v1035_v45 = vmul.f32 0.0078125, %v989_v21 }
 0x2e8   :  { %v1266_v47 = vmax.f32 %v1228_v19, 0.0  ;;  %v1187_v27 = vmul.f32 %v2724_v63, %v1145_v44 }
 0x2e9   :  { %v2075_v12 = vpop.eup %2074  ;;  %v1073_v53 = vadd.f32 1e-05, %v1035_v45 }
 0x2ea   :  { %1880 = vmatprep.mubr.f32.mxu1 %v1266_v47  ;;  %v991_v31 = vpop.xlane.xlu0 %990  ;;  %v1229_v29 = vadd.f32 %v2730_v1, %v1187_v27  ;;  %v1146_v55 = vmul.f32 %v2075_v12, %v2662_v2 }
 0x2eb   :  { %2080 = vrsqrt.f32 %v1073_v53  ;;  %v1036_v26 = vmul.f32 0.0078125, %v991_v31 }
 0x2ec   :  { %v1267_v51 = vmax.f32 %v1229_v29, 0.0  ;;  %v1188_v35 = vmul.f32 %v2724_v63, %v1146_v55 }
 0x2ed   :  { %v2077_v25 = vpop.eup %2076  ;;  %v1074_v59 = vadd.f32 1e-05, %v1036_v26 }
 0x2ee   :  { %v993_v50 = vpop.xlane.xlu1 %992  ;;  %1881 = vmatmul.mubr.f32.gmra.mrb[62].mxu1 %v1267_v51  ;;  %v1230_v15 = vadd.f32 %v2730_v1, %v1188_v35  ;;  %v1147_v57 = vmul.f32 %v2077_v25, %v2667_v5 }
 0x2ef   :  { %2082 = vrsqrt.f32 %v1074_v59  ;;  %v1037_v34 = vmul.f32 0.0078125, %v993_v50 }
 0x2f0   :  { %v1268_v9 = vmax.f32 %v1230_v15, 0.0  ;;  %v1189_v52 = vmul.f32 %v2724_v63, %v1147_v57 }
 0x2f1   :  { %v2079_v58 = vpop.eup %2078  ;;  %v1075_v2 = vadd.f32 1e-05, %v1037_v34 }
 0x2f2   :  { %1883 = vmatprep.mubr.f32.mxu1 %v1268_v9  ;;  %v995_v61 = vpop.xlane.xlu0 %994  ;;  %v1231_v0 = vadd.f32 %v2730_v1, %v1189_v52  ;;  %v1148_v46 = vmul.f32 %v2079_v58, %v2672_v4 }
 0x2f3   :  { %2084 = vrsqrt.f32 %v1075_v2  ;;  %v1038_v56 = vmul.f32 0.0078125, %v995_v61 }
 0x2f4   :  { %v1269_v14 = vmax.f32 %v1231_v0, 0.0  ;;  %v1190_v13 = vmul.f32 %v2724_v63, %v1148_v46 }
 0x2f5   :  { %v2081_v17 = vpop.eup %2080  ;;  %v1076_v5 = vadd.f32 1e-05, %v1038_v56 }
 0x2f6   :  { %v997_v32 = vpop.xlane.xlu1 %996  ;;  %1884 = vmatmul.mubr.f32.gmra.mrb[64].mxu1 %v1269_v14  ;;  %v1232_v40 = vadd.f32 %v2730_v1, %v1190_v13  ;;  %v1149_v10 = vmul.f32 %v2081_v17, %v2677_v7 }
 0x2f7   :  { %2086 = vrsqrt.f32 %v1076_v5  ;;  %v1039_v30 = vmul.f32 0.0078125, %v997_v32 }
 0x2f8   :  { %v1270_v8 = vmax.f32 %v1232_v40, 0.0  ;;  %v1191_v24 = vmul.f32 %v2724_v63, %v1149_v10 }
 0x2f9   :  { %v2083_v38 = vpop.eup %2082  ;;  %v1077_v4 = vadd.f32 1e-05, %v1039_v30 }
 0x2fa   :  { %1886 = vmatprep.mubr.f32.mxu1 %v1270_v8  ;;  %v999_v20 = vpop.xlane.xlu0 %998  ;;  %v1233_v33 = vadd.f32 %v2730_v1, %v1191_v24  ;;  %v1150_v22 = vmul.f32 %v2083_v38, %v2682_v42 }
 0x2fb   :  { %2088 = vrsqrt.f32 %v1077_v4  ;;  %v1040_v43 = vmul.f32 0.0078125, %v999_v20 }
 0x2fc   :  { %v1271_v39 = vmax.f32 %v1233_v33, 0.0  ;;  %v1192_v16 = vmul.f32 %v2724_v63, %v1150_v22 }
 0x2fd   :  { %v2085_v49 = vpop.eup %2084  ;;  %v1078_v7 = vadd.f32 1e-05, %v1040_v43 }
 0x2fe   :  { %v1001_v23 = vpop.xlane.xlu1 %1000  ;;  %1887 = vmatmul.mubr.f32.gmra.mrb[66].mxu1 %v1271_v39  ;;  %v1234_v62 = vadd.f32 %v2730_v1, %v1192_v16  ;;  %v1151_v36 = vmul.f32 %v2085_v49, %v2687_v48 }
 0x2ff   :  { %2090 = vrsqrt.f32 %v1078_v7  ;;  %v1041_v11 = vmul.f32 0.0078125, %v1001_v23 }
 0x300   :  { %v1272_v37 = vmax.f32 %v1234_v62, 0.0  ;;  %v1193_v6 = vmul.f32 %v2724_v63, %v1151_v36 }
 0x301   :  { %v2087_v21 = vpop.eup %2086  ;;  %v1079_v42 = vadd.f32 1e-05, %v1041_v11 }
 0x302   :  { %1889 = vmatprep.mubr.f32.mxu1 %v1272_v37  ;;  %v1003_v19 = vpop.xlane.xlu0 %1002  ;;  %v1235_v44 = vadd.f32 %v2730_v1, %v1193_v6  ;;  %v1152_v45 = vmul.f32 %v2087_v21, %v2692_v54 }
 0x303   :  { %2092 = vrsqrt.f32 %v1079_v42  ;;  %v1042_v47 = vmul.f32 0.0078125, %v1003_v19 }
 0x304   :  { %v1273_v27 = vmax.f32 %v1235_v44, 0.0  ;;  %v1194_v12 = vmul.f32 %v2724_v63, %v1152_v45 }
 0x305   :  { %v2089_v53 = vpop.eup %2088  ;;  %v1080_v48 = vadd.f32 1e-05, %v1042_v47 }
 0x306   :  { %v1005_v31 = vpop.xlane.xlu1 %1004  ;;  %1890 = vmatmul.mubr.f32.gmra.mrb[68].mxu1 %v1273_v27  ;;  %v1236_v29 = vadd.f32 %v2730_v1, %v1194_v12  ;;  %v1153_v55 = vmul.f32 %v2089_v53, %v2697_v60 }
 0x307   :  { %2094 = vrsqrt.f32 %v1080_v48  ;;  %v1043_v26 = vmul.f32 0.0078125, %v1005_v31 }
 0x308   :  { %v1274_v51 = vmax.f32 %v1236_v29, 0.0  ;;  %v1195_v35 = vmul.f32 %v2724_v63, %v1153_v55 }
 0x309   :  { %v2091_v25 = vpop.eup %2090  ;;  %v1081_v54 = vadd.f32 1e-05, %v1043_v26 }
 0x30a   :  { %1892 = vmatprep.mubr.f32.mxu1 %v1274_v51  ;;  %v1237_v59 = vadd.f32 %v2730_v1, %v1195_v35  ;;  %v1154_v50 = vmul.f32 %v2091_v25, %v2702_v3 }
 0x30b   :  { %2096 = vrsqrt.f32 %v1081_v54 }
 0x30c   :  { %v1275_v15 = vmax.f32 %v1237_v59, 0.0  ;;  %v1196_v57 = vmul.f32 %v2724_v63, %v1154_v50 }
 0x30d   :  { %v2093_v34 = vpop.eup %2092 }
 0x30e   :  { %1893 = vmatmul.mubr.f32.gmra.mrb[70].mxu1 %v1275_v15  ;;  %v1238_v60 = vadd.f32 %v2730_v1, %v1196_v57  ;;  %v1155_v9 = vmul.f32 %v2093_v34, %v2707_v18 }
 0x310   :  { %v1276_v52 = vmax.f32 %v1238_v60, 0.0  ;;  %v1197_v58 = vmul.f32 %v2724_v63, %v1155_v9 }
 0x311   :  { %v2095_v2 = vpop.eup %2094 }
 0x312   :  { %1895 = vmatprep.mubr.f32.mxu1 %v1276_v52  ;;  %v1239_v61 = vadd.f32 %v2730_v1, %v1197_v58  ;;  %v1156_v0 = vmul.f32 %v2095_v2, %v2712_v28  ;;  %v2848_v28 = vld [vmem:[%s2905_s2 + $0x3] ss:$0 sm:$0xff]  ;;  %s2200_s2 = smov [#allocation8]  }
 0x313   :  { %s1598_s10 = sshll.u32 %s2200_s2, 4  ;;  %s1599_s10 = int_to_ptr.vmem [resolvable:$true] %s1598_s10 }
 0x314   :  { %v1277_v3 = vmax.f32 %v1239_v61, 0.0  ;;  %v1198_v46 = vmul.f32 %v2724_v63, %v1156_v0  ;;  %s2164_s11 = scalar_lea.vmem %s1599_s10, 4864  ;;  %p2169_p11 = scmp.lt.s32.totalorder %s1599_s10, %s1599_s10 }
 0x315   :  { %v2097_v56 = vpop.eup %2096  ;;  %p2165_p10 = scmp.ne.s32.totalorder %s1599_s10, %s2164_s11  ;;  %p2170_p12 = scmp.lt.s32.totalorder %s2164_s11, %s2164_s11 }
 0x316   :  { %1896 = vmatmul.mubr.f32.gmra.mrb[72].mxu1 %v1277_v3  ;;  %v1240_v14 = vadd.f32 %v2730_v1, %v1198_v46  ;;  %v1157_v13 = vmul.f32 %v2097_v56, %v2717_v41 }
 0x317   :  { %p2171_p13 = por %p2170_p12, %p2169_p11 }
 0x318   :  { %v1278_v17 = vmax.f32 %v1240_v14, 0.0  ;;  %v1199_v18 = vmul.f32 %v2724_v63, %v1157_v13 }
 0x319   :  { %p2172_p0 = pnand %p2171_p13, %p2165_p10 }
 0x31a   :  { %1898 = vmatprep.mubr.f32.mxu1 %v1278_v17  ;;  %v1241_v5 = vadd.f32 %v2730_v1, %v1199_v18 }
 0x31c   :  { %v1279_v32 = vmax.f32 %v1241_v5, 0.0 }
 0x31e   :  { %1899 = vmatmul.mubr.f32.gmra.mrb[74].mxu1 %v1279_v32 }
 0x361   :  { %v1846_v40 = vpop.f32.mrb[38].mxu1 }
 0x362   :  { %v1372_v10 = vadd.f32 %v1846_v40, %v2848_v28  ;;  %v1366_v30 = vpop.f32.mrb[39].mxu1 }
 0x363   :  { %v1367_v8 = vadd.f32 %v2848_v28, %v1366_v30 }
 0x364   :  { %1556 = vst [vmem:[#allocation8 + $0x8] sm:$0xff] %v1372_v10 }
 0x365   :  { %1555 = vst [vmem:[#allocation8] sm:$0xff] %v1367_v8 }
 0x369   :  { %v1849_v41 = vpop.f32.mrb[40].mxu1 }
 0x36a   :  { %v1382_v63 = vadd.f32 %v1849_v41, %v2848_v28  ;;  %v1376_v24 = vpop.f32.mrb[41].mxu1 }
 0x36b   :  { %v1377_v1 = vadd.f32 %v2848_v28, %v1376_v24 }
 0x36c   :  { %1558 = vst [vmem:[#allocation8 + $0x18] sm:$0xff] %v1382_v63 }
 0x36d   :  { %1557 = vst [vmem:[#allocation8 + $0x10] sm:$0xff] %v1377_v1 }
 0x371   :  { %v1852_v38 = vpop.f32.mrb[42].mxu1 }
 0x372   :  { %v1392_v4 = vadd.f32 %v1852_v38, %v2848_v28  ;;  %v1386_v20 = vpop.f32.mrb[43].mxu1 }
 0x373   :  { %v1387_v33 = vadd.f32 %v2848_v28, %v1386_v20 }
 0x374   :  { %1560 = vst [vmem:[#allocation8 + $0x28] sm:$0xff] %v1392_v4 }
 0x375   :  { %1559 = vst [vmem:[#allocation8 + $0x20] sm:$0xff] %v1387_v33 }
 0x379   :  { %v1855_v22 = vpop.f32.mrb[44].mxu1 }
 0x37a   :  { %v1402_v43 = vadd.f32 %v1855_v22, %v2848_v28  ;;  %v1396_v39 = vpop.f32.mrb[45].mxu1 }
 0x37b   :  { %v1397_v16 = vadd.f32 %v2848_v28, %v1396_v39 }
 0x37c   :  { %1562 = vst [vmem:[#allocation8 + $0x38] sm:$0xff] %v1402_v43 }
 0x37d   :  { %1561 = vst [vmem:[#allocation8 + $0x30] sm:$0xff] %v1397_v16 }
 0x381   :  { %v1858_v49 = vpop.f32.mrb[46].mxu1 }
 0x382   :  { %v1412_v7 = vadd.f32 %v1858_v49, %v2848_v28  ;;  %v1406_v23 = vpop.f32.mrb[47].mxu1 }
 0x383   :  { %v1407_v62 = vadd.f32 %v2848_v28, %v1406_v23 }
 0x384   :  { %1564 = vst [vmem:[#allocation8 + $0x48] sm:$0xff] %v1412_v7 }
 0x385   :  { %1563 = vst [vmem:[#allocation8 + $0x40] sm:$0xff] %v1407_v62 }
 0x389   :  { %v1861_v36 = vpop.f32.mrb[48].mxu1 }
 0x38a   :  { %v1422_v11 = vadd.f32 %v1861_v36, %v2848_v28  ;;  %v1416_v37 = vpop.f32.mrb[49].mxu1 }
 0x38b   :  { %v1417_v6 = vadd.f32 %v2848_v28, %v1416_v37 }
 0x38c   :  { %1566 = vst [vmem:[#allocation8 + $0x58] sm:$0xff] %v1422_v11 }
 0x38d   :  { %1565 = vst [vmem:[#allocation8 + $0x50] sm:$0xff] %v1417_v6 }
 0x391   :  { %v1864_v21 = vpop.f32.mrb[50].mxu1 }
 0x392   :  { %v1432_v42 = vadd.f32 %v1864_v21, %v2848_v28  ;;  %v1426_v19 = vpop.f32.mrb[51].mxu1 }
 0x393   :  { %v1427_v44 = vadd.f32 %v2848_v28, %v1426_v19 }
 0x394   :  { %1568 = vst [vmem:[#allocation8 + $0x68] sm:$0xff] %v1432_v42 }
 0x395   :  { %1567 = vst [vmem:[#allocation8 + $0x60] sm:$0xff] %v1427_v44 }
 0x399   :  { %v1867_v45 = vpop.f32.mrb[52].mxu1 }
 0x39a   :  { %v1442_v47 = vadd.f32 %v1867_v45, %v2848_v28  ;;  %v1436_v27 = vpop.f32.mrb[53].mxu1 }
 0x39b   :  { %v1437_v12 = vadd.f32 %v2848_v28, %v1436_v27 }
 0x39c   :  { %1570 = vst [vmem:[#allocation8 + $0x78] sm:$0xff] %v1442_v47 }
 0x39d   :  { %1569 = vst [vmem:[#allocation8 + $0x70] sm:$0xff] %v1437_v12 }
 0x3a1   :  { %v1870_v53 = vpop.f32.mrb[54].mxu1 }
 0x3a2   :  { %v1452_v48 = vadd.f32 %v1870_v53, %v2848_v28  ;;  %v1446_v31 = vpop.f32.mrb[55].mxu1 }
 0x3a3   :  { %v1447_v29 = vadd.f32 %v2848_v28, %v1446_v31 }
 0x3a4   :  { %1572 = vst [vmem:[#allocation8 + $0x88] sm:$0xff] %v1452_v48 }
 0x3a5   :  { %1571 = vst [vmem:[#allocation8 + $0x80] sm:$0xff] %v1447_v29 }
 0x3a9   :  { %v1873_v55 = vpop.f32.mrb[56].mxu1 }
 0x3aa   :  { %v1462_v26 = vadd.f32 %v1873_v55, %v2848_v28  ;;  %v1456_v51 = vpop.f32.mrb[57].mxu1 }
 0x3ab   :  { %v1457_v35 = vadd.f32 %v2848_v28, %v1456_v51 }
 0x3ac   :  { %1574 = vst [vmem:[#allocation8 + $0x98] sm:$0xff] %v1462_v26 }
 0x3ad   :  { %1573 = vst [vmem:[#allocation8 + $0x90] sm:$0xff] %v1457_v35 }
 0x3b1   :  { %v1876_v25 = vpop.f32.mrb[58].mxu1 }
 0x3b2   :  { %v1472_v54 = vadd.f32 %v1876_v25, %v2848_v28  ;;  %v1466_v59 = vpop.f32.mrb[59].mxu1 }
 0x3b3   :  { %v1467_v50 = vadd.f32 %v2848_v28, %v1466_v59 }
 0x3b4   :  { %1576 = vst [vmem:[#allocation8 + $0xa8] sm:$0xff] %v1472_v54 }
 0x3b5   :  { %1575 = vst [vmem:[#allocation8 + $0xa0] sm:$0xff] %v1467_v50 }
 0x3b9   :  { %v1879_v15 = vpop.f32.mrb[60].mxu1 }
 0x3ba   :  { %v1482_v57 = vadd.f32 %v1879_v15, %v2848_v28  ;;  %v1476_v34 = vpop.f32.mrb[61].mxu1 }
 0x3bb   :  { %v1477_v60 = vadd.f32 %v2848_v28, %v1476_v34 }
 0x3bc   :  { %1578 = vst [vmem:[#allocation8 + $0xb8] sm:$0xff] %v1482_v57 }
 0x3bd   :  { %1577 = vst [vmem:[#allocation8 + $0xb0] sm:$0xff] %v1477_v60 }
 0x3c1   :  { %v1882_v9 = vpop.f32.mrb[62].mxu1 }
 0x3c2   :  { %v1492_v52 = vadd.f32 %v1882_v9, %v2848_v28  ;;  %v1486_v58 = vpop.f32.mrb[63].mxu1 }
 0x3c3   :  { %v1487_v2 = vadd.f32 %v2848_v28, %v1486_v58 }
 0x3c4   :  { %1580 = vst [vmem:[#allocation8 + $0xc8] sm:$0xff] %v1492_v52 }
 0x3c5   :  { %1579 = vst [vmem:[#allocation8 + $0xc0] sm:$0xff] %v1487_v2 }
 0x3c9   :  { %v1885_v61 = vpop.f32.mrb[64].mxu1 }
 0x3ca   :  { %v1502_v0 = vadd.f32 %v1885_v61, %v2848_v28  ;;  %v1496_v3 = vpop.f32.mrb[65].mxu1 }
 0x3cb   :  { %v1497_v46 = vadd.f32 %v2848_v28, %v1496_v3 }
 0x3cc   :  { %1582 = vst [vmem:[#allocation8 + $0xd8] sm:$0xff] %v1502_v0 }
 0x3cd   :  { %1581 = vst [vmem:[#allocation8 + $0xd0] sm:$0xff] %v1497_v46 }
 0x3d1   :  { %v1888_v56 = vpop.f32.mrb[66].mxu1 }
 0x3d2   :  { %v1512_v14 = vadd.f32 %v1888_v56, %v2848_v28  ;;  %v1506_v13 = vpop.f32.mrb[67].mxu1 }
 0x3d3   :  { %v1507_v17 = vadd.f32 %v2848_v28, %v1506_v13 }
 0x3d4   :  { %1584 = vst [vmem:[#allocation8 + $0xe8] sm:$0xff] %v1512_v14 }
 0x3d5   :  { %1583 = vst [vmem:[#allocation8 + $0xe0] sm:$0xff] %v1507_v17 }
 0x3d9   :  { %v1891_v18 = vpop.f32.mrb[68].mxu1 }
 0x3da   :  { %v1522_v5 = vadd.f32 %v1891_v18, %v2848_v28  ;;  %v1516_v32 = vpop.f32.mrb[69].mxu1 }
 0x3db   :  { %v1517_v40 = vadd.f32 %v2848_v28, %v1516_v32 }
 0x3dc   :  { %1586 = vst [vmem:[#allocation8 + $0xf8] sm:$0xff] %v1522_v5 }
 0x3dd   :  { %1585 = vst [vmem:[#allocation8 + $0xf0] sm:$0xff] %v1517_v40 }
 0x3e1   :  { %v1894_v10 = vpop.f32.mrb[70].mxu1 }
 0x3e2   :  { %v1532_v30 = vadd.f32 %v1894_v10, %v2848_v28  ;;  %v1526_v8 = vpop.f32.mrb[71].mxu1 }
 0x3e3   :  { %v1527_v41 = vadd.f32 %v2848_v28, %v1526_v8 }
 0x3e4   :  { %1588 = vst [vmem:[#allocation8 + $0x108] sm:$0xff] %v1532_v30 }
 0x3e5   :  { %1587 = vst [vmem:[#allocation8 + $0x100] sm:$0xff] %v1527_v41 }
 0x3e9   :  { %v1897_v63 = vpop.f32.mrb[72].mxu1 }
 0x3ea   :  { %v1542_v24 = vadd.f32 %v1897_v63, %v2848_v28  ;;  %v1536_v1 = vpop.f32.mrb[73].mxu1 }
 0x3eb   :  { %v1537_v38 = vadd.f32 %v2848_v28, %v1536_v1 }
 0x3ec   :  { %1590 = vst [vmem:[#allocation8 + $0x118] sm:$0xff] %v1542_v24 }
 0x3ed   :  { %1589 = vst [vmem:[#allocation8 + $0x110] sm:$0xff] %v1537_v38 }
 0x3f1   :  { %v1900_v4 = vpop.f32.mrb[74].mxu1 }
 0x3f2   :  { %v1552_v20 = vadd.f32 %v1900_v4, %v2848_v28  ;;  %v1546_v33 = vpop.f32.mrb[75].mxu1 }
 0x3f3   :  { %v1547_v22 = vadd.f32 %v2848_v28, %v1546_v33 }
 0x3f4   :  { %1592 = vst [vmem:[#allocation8 + $0x128] sm:$0xff] %v1552_v20 }
 0x3f5   :  { %1591 = vst [vmem:[#allocation8 + $0x120] sm:$0xff] %v1547_v22 }
 0x3f6   :  { %2175 = shalt.err (!%p2172_p0)
}
 0x3f7   :  { %s2176_s13 = scalar_lea.hbm %s2907_s4, 4864 }
 0x3f8   :  { %p2177_p1 = scmp.ne.s32.totalorder %s2907_s4, %s2176_s13  ;;  %p2180_p2 = scmp.lt.u32.totalorder %s2176_s13, %s2907_s4 }
 0x3fa   :  { %p2182_p3 = pnand %p2180_p2, %p2177_p1 }
 0x3fc   :  { %2185 = shalt.err (!%p2182_p3)
}
 0x3fd   :  { %1604 = dma.vmem_to_hbm [thread:$0]  %s1599_s10, 4864, %s2907_s4, [#allocation4], %s2193_s25, %s2193_s25, %s2194_s26  }
 0x3fe   :  { %2190 = dma.done.wait [#allocation4], 4864  }
 0x3ff   :  { %2191 = vsyncadd [#allocation4], 4294962432 }
 0x400   :  { %1608 = vsyncpa [#allocation3], 1 }
 0x401   :  { %1609 = vsyncpa [#allocation6], 1 }
 0x402   :  { %1610 = vsyncpa [#allocation4], 1 }

</bundles_post_ra>
